<compile_context>
chip_gen: v7x
topology: tpu7x:2x2x1
jax: 0.10.0
libtpu: 0.0.40
codegen_flags: <defaults>
</compile_context>

<pallas_src>
import jax
import jax.numpy as jnp
from jax.experimental import pallas as pl
from jax.experimental.pallas import tpu as pltpu


def _bilinear_matrix(n_out: int, n_in: int) -> jnp.ndarray:
    """Interpolation matrix matching F.interpolate(mode='bilinear', align_corners=True)
    along one axis: out = M @ in, M shape (n_out, n_in)."""
    if n_in == 1:
        return jnp.ones((n_out, 1), dtype=jnp.float32)
    if n_out == 1:
        return jnp.zeros((1, n_in), dtype=jnp.float32).at[0, 0].set(1.0)
    src = jnp.arange(n_out, dtype=jnp.float32) * ((n_in - 1) / (n_out - 1))
    lo = jnp.clip(jnp.floor(src).astype(jnp.int32), 0, n_in - 2)
    frac = src - lo.astype(jnp.float32)
    rows = jnp.arange(n_out)
    m = jnp.zeros((n_out, n_in), dtype=jnp.float32)
    m = m.at[rows, lo].add(1.0 - frac)
    m = m.at[rows, lo + 1].add(frac)
    return m


def _attention_kernel(f2_ref, f3_ref, f4_ref,
                      u3_ref, u3t_ref, u4_ref, u4t_ref, uo_ref, uot_ref,
                      o_ref):
    """One batch element per grid step.

    f2_ref: (C2, ms, ms)   f3_ref: (C3, ms3, ms3)   f4_ref: (C4, ms4, ms4)
    u3 : (ms, ms3)   u3t : (ms3, ms)
    u4 : (ms, ms4)   u4t : (ms4, ms)
    uo : (att, ms)   uot : (ms, att)
    o_ref: (att, att)
    """
    # Channel means: adds across the leading (non-tiled) dim, static divisor.
    m2 = jnp.mean(f2_ref[...], axis=0)          # (ms, ms)
    m3 = jnp.mean(f3_ref[...], axis=0)          # (ms3, ms3)
    m4 = jnp.mean(f4_ref[...], axis=0)          # (ms4, ms4)

    # Bilinear upsample to (ms, ms) on the MXU:  U @ X @ U^T.
    f3_up = jnp.dot(u3_ref[...],
                    jnp.dot(m3, u3t_ref[...], preferred_element_type=jnp.float32),
                    preferred_element_type=jnp.float32)
    f4_up = jnp.dot(u4_ref[...],
                    jnp.dot(m4, u4t_ref[...], preferred_element_type=jnp.float32),
                    preferred_element_type=jnp.float32)

    att = (m2 + f3_up + f4_up) * (1.0 / 3.0)    # (ms, ms)

    # Final upsample to (att_size, att_size).
    tmp = jnp.dot(att, uot_ref[...], preferred_element_type=jnp.float32)   # (ms, att)
    out = jnp.dot(uo_ref[...], tmp, preferred_element_type=jnp.float32)    # (att, att)
    o_ref[...] = out.astype(o_ref.dtype)


def attention_forward(features, att_size: int) -> jnp.ndarray:
    """Equivalent of Attention.forward(features) -> (B, att_size, att_size)."""
    f1, f2, f3, f4 = features                   # f1 unused, exactly like the PyTorch forward
    del f1
    B, C2, ms, ms_w = f2.shape
    _, C3, ms3, _ = f3.shape
    _, C4, ms4, _ = f4.shape
    assert ms == ms_w, "square feature maps expected"

    # Fixed interpolation matrices (the only 'parameters' of this module).
    u3 = _bilinear_matrix(ms, ms3)
    u4 = _bilinear_matrix(ms, ms4)
    uo = _bilinear_matrix(att_size, ms)
    u3t, u4t, uot = u3.T, u4.T, uo.T

    out_dtype = f2.dtype
    f2 = f2.astype(jnp.float32)
    f3 = f3.astype(jnp.float32)
    f4 = f4.astype(jnp.float32)

    return pl.pallas_call(
        _attention_kernel,
        out_shape=jax.ShapeDtypeStruct((B, att_size, att_size), out_dtype),
        grid_spec=pltpu.PrefetchScalarGridSpec(
            num_scalar_prefetch=0,
            grid=(B,),
            in_specs=[
                pl.BlockSpec((pl.Squeezed(), C2, ms, ms), lambda b: (b, 0, 0, 0)),
                pl.BlockSpec((pl.Squeezed(), C3, ms3, ms3), lambda b: (b, 0, 0, 0)),
                pl.BlockSpec((pl.Squeezed(), C4, ms4, ms4), lambda b: (b, 0, 0, 0)),
                pl.BlockSpec((ms, ms3), lambda b: (0, 0)),
                pl.BlockSpec((ms3, ms), lambda b: (0, 0)),
                pl.BlockSpec((ms, ms4), lambda b: (0, 0)),
                pl.BlockSpec((ms4, ms), lambda b: (0, 0)),
                pl.BlockSpec((att_size, ms), lambda b: (0, 0)),
                pl.BlockSpec((ms, att_size), lambda b: (0, 0)),
            ],
            out_specs=pl.BlockSpec((pl.Squeezed(), att_size, att_size),
                                   lambda b: (b, 0, 0)),
        ),
        compiler_params=pltpu.CompilerParams(
            dimension_semantics=("parallel",),          # shard batch over TCs (v7x)
            vmem_limit_bytes=32 * 1024 * 1024,          # safe on v5e/v6e/v7x; usage ~4 MiB
        ),
    )(f2, f3, f4, u3, u3t, u4, u4t, uo, uot)


# ---------------- plain-JAX reference (matches PyTorch op order) ----------------

def _bilinear_upsample_ref(x, n_out):
    mh = _bilinear_matrix(n_out, x.shape[-2])
    mw = _bilinear_matrix(n_out, x.shape[-1])
    return jnp.einsum('oh,...hw,pw->...op', mh, x.astype(jnp.float32), mw)


def attention_ref(features, att_size):
    _, f2, f3, f4 = features
    ms = f2.shape[-1]
    f4_up = _bilinear_upsample_ref(f4, ms).mean(axis=1)   # upsample per channel, then mean
    f3_up = _bilinear_upsample_ref(f3, ms).mean(axis=1)
    att = (f2.mean(axis=1) + f3_up + f4_up) / 3.0
    return _bilinear_upsample_ref(att, att_size)


if __name__ == "__main__":
    img_size = 128      # att_size = img_size -> (128, 128) output block: lane-dense stores
    batch = 2

    key = jax.random.PRNGKey(0)
    k1, k2, k3, k4 = jax.random.split(key, 4)
    f1 = jax.random.normal(k1, (batch, 24, img_size // 4, img_size // 4), dtype=jnp.float32)
    f2 = jax.random.normal(k2, (batch, 48, img_size // 8, img_size // 8), dtype=jnp.float32)
    f3 = jax.random.normal(k3, (batch, 96, img_size // 16, img_size // 16), dtype=jnp.float32)
    f4 = jax.random.normal(k4, (batch, 192, img_size // 32, img_size // 32), dtype=jnp.float32)
    features = (f1, f2, f3, f4)

    y = attention_forward(features, att_size=img_size)
    y = jax.block_until_ready(y)

    y_ref = attention_ref(features, att_size=img_size)
    assert y.shape == (batch, img_size, img_size), y.shape
    assert jnp.allclose(y, y_ref, atol=1e-4, rtol=1e-4), \
        float(jnp.max(jnp.abs(y - y_ref)))

    print("KERNEL_OK")
</pallas_src>

<mosaic_0001>
module attributes {stable_mosaic.version = 11 : i64} {
  func.func @_attention_kernel(%arg0: i32, %arg1: memref<1x48x16x16xf32, #tpu.memory_space<vmem>>, %arg2: memref<1x96x8x8xf32, #tpu.memory_space<vmem>>, %arg3: memref<1x192x4x4xf32, #tpu.memory_space<vmem>>, %arg4: memref<16x8xf32, #tpu.memory_space<vmem>>, %arg5: memref<8x16xf32, #tpu.memory_space<vmem>>, %arg6: memref<16x4xf32, #tpu.memory_space<vmem>>, %arg7: memref<4x16xf32, #tpu.memory_space<vmem>>, %arg8: memref<128x16xf32, #tpu.memory_space<vmem>>, %arg9: memref<16x128xf32, #tpu.memory_space<vmem>>, %arg10: memref<1x128x128xf32, #tpu.memory_space<vmem>>) attributes {dimension_semantics = [#tpu.dimension_semantics<parallel>], iteration_bounds = array<i64: 2>, scalar_prefetch = 0 : i64, scratch_operands = 0 : i64, tpu.core_type = #tpu.core_type<tc>, window_params = [{transform_indices = @transform_0, window_bounds = array<i64: 1, 48, 16, 16>}, {transform_indices = @transform_1, window_bounds = array<i64: 1, 96, 8, 8>}, {transform_indices = @transform_2, window_bounds = array<i64: 1, 192, 4, 4>}, {pipeline_mode = #tpu.pipeline_mode<synchronous>, transform_indices = @transform_3, window_bounds = array<i64: 16, 8>}, {pipeline_mode = #tpu.pipeline_mode<synchronous>, transform_indices = @transform_4, window_bounds = array<i64: 8, 16>}, {pipeline_mode = #tpu.pipeline_mode<synchronous>, transform_indices = @transform_5, window_bounds = array<i64: 16, 4>}, {pipeline_mode = #tpu.pipeline_mode<synchronous>, transform_indices = @transform_6, window_bounds = array<i64: 4, 16>}, {pipeline_mode = #tpu.pipeline_mode<synchronous>, transform_indices = @transform_7, window_bounds = array<i64: 128, 16>}, {pipeline_mode = #tpu.pipeline_mode<synchronous>, transform_indices = @transform_8, window_bounds = array<i64: 16, 128>}, {transform_indices = @transform_9, window_bounds = array<i64: 1, 128, 128>}]} {
    %c0 = arith.constant 0 : index
    %c0_0 = arith.constant 0 : index
    %c0_1 = arith.constant 0 : index
    %c0_2 = arith.constant 0 : index
    %0 = vector.load %arg1[%c0, %c0_0, %c0_1, %c0_2] : memref<1x48x16x16xf32, #tpu.memory_space<vmem>>, vector<1x48x16x16xf32>
    %1 = vector.shape_cast %0 : vector<1x48x16x16xf32> to vector<48x16x16xf32>
    %cst = arith.constant dense<0.000000e+00> : vector<16x16xf32>
    %2 = vector.multi_reduction <add>, %1, %cst [0] : vector<48x16x16xf32> to vector<16x16xf32>
    %cst_3 = arith.constant 4.800000e+01 : f32
    %3 = vector.broadcast %cst_3 : f32 to vector<16x16xf32>
    %4 = arith.divf %2, %3 : vector<16x16xf32>
    %c0_4 = arith.constant 0 : index
    %c0_5 = arith.constant 0 : index
    %c0_6 = arith.constant 0 : index
    %c0_7 = arith.constant 0 : index
    %5 = vector.load %arg2[%c0_4, %c0_5, %c0_6, %c0_7] : memref<1x96x8x8xf32, #tpu.memory_space<vmem>>, vector<1x96x8x8xf32>
    %6 = vector.shape_cast %5 : vector<1x96x8x8xf32> to vector<96x8x8xf32>
    %cst_8 = arith.constant dense<0.000000e+00> : vector<8x8xf32>
    %7 = vector.multi_reduction <add>, %6, %cst_8 [0] : vector<96x8x8xf32> to vector<8x8xf32>
    %cst_9 = arith.constant 9.600000e+01 : f32
    %8 = vector.broadcast %cst_9 : f32 to vector<8x8xf32>
    %9 = arith.divf %7, %8 : vector<8x8xf32>
    %c0_10 = arith.constant 0 : index
    %c0_11 = arith.constant 0 : index
    %c0_12 = arith.constant 0 : index
    %c0_13 = arith.constant 0 : index
    %10 = vector.load %arg3[%c0_10, %c0_11, %c0_12, %c0_13] : memref<1x192x4x4xf32, #tpu.memory_space<vmem>>, vector<1x192x4x4xf32>
    %11 = vector.shape_cast %10 : vector<1x192x4x4xf32> to vector<192x4x4xf32>
    %cst_14 = arith.constant dense<0.000000e+00> : vector<4x4xf32>
    %12 = vector.multi_reduction <add>, %11, %cst_14 [0] : vector<192x4x4xf32> to vector<4x4xf32>
    %cst_15 = arith.constant 1.920000e+02 : f32
    %13 = vector.broadcast %cst_15 : f32 to vector<4x4xf32>
    %14 = arith.divf %12, %13 : vector<4x4xf32>
    %c0_16 = arith.constant 0 : index
    %c0_17 = arith.constant 0 : index
    %15 = vector.load %arg4[%c0_16, %c0_17] : memref<16x8xf32, #tpu.memory_space<vmem>>, vector<16x8xf32>
    %c0_18 = arith.constant 0 : index
    %c0_19 = arith.constant 0 : index
    %16 = vector.load %arg5[%c0_18, %c0_19] : memref<8x16xf32, #tpu.memory_space<vmem>>, vector<8x16xf32>
    %cst_20 = arith.constant dense<0.000000e+00> : vector<8x16xf32>
    %17 = tpu.matmul %9, %16, %cst_20 {dimension_numbers = #tpu.dot_dimension_numbers<[1], [0], [0], [1], [0, 0, 1, 1], [], []>} : vector<8x8xf32>, vector<8x16xf32>, vector<8x16xf32> -> vector<8x16xf32>
    %cst_21 = arith.constant dense<0.000000e+00> : vector<16x16xf32>
    %18 = tpu.matmul %15, %17, %cst_21 {dimension_numbers = #tpu.dot_dimension_numbers<[1], [0], [0], [1], [0, 0, 1, 1], [], []>} : vector<16x8xf32>, vector<8x16xf32>, vector<16x16xf32> -> vector<16x16xf32>
    %c0_22 = arith.constant 0 : index
    %c0_23 = arith.constant 0 : index
    %19 = vector.load %arg6[%c0_22, %c0_23] : memref<16x4xf32, #tpu.memory_space<vmem>>, vector<16x4xf32>
    %c0_24 = arith.constant 0 : index
    %c0_25 = arith.constant 0 : index
    %20 = vector.load %arg7[%c0_24, %c0_25] : memref<4x16xf32, #tpu.memory_space<vmem>>, vector<4x16xf32>
    %cst_26 = arith.constant dense<0.000000e+00> : vector<4x16xf32>
    %21 = tpu.matmul %14, %20, %cst_26 {dimension_numbers = #tpu.dot_dimension_numbers<[1], [0], [0], [1], [0, 0, 1, 1], [], []>} : vector<4x4xf32>, vector<4x16xf32>, vector<4x16xf32> -> vector<4x16xf32>
    %cst_27 = arith.constant dense<0.000000e+00> : vector<16x16xf32>
    %22 = tpu.matmul %19, %21, %cst_27 {dimension_numbers = #tpu.dot_dimension_numbers<[1], [0], [0], [1], [0, 0, 1, 1], [], []>} : vector<16x4xf32>, vector<4x16xf32>, vector<16x16xf32> -> vector<16x16xf32>
    %23 = arith.addf %4, %18 : vector<16x16xf32>
    %24 = arith.addf %23, %22 : vector<16x16xf32>
    %cst_28 = arith.constant 0.333333343 : f32
    %25 = vector.broadcast %cst_28 : f32 to vector<16x16xf32>
    %26 = arith.mulf %24, %25 : vector<16x16xf32>
    %c0_29 = arith.constant 0 : index
    %c0_30 = arith.constant 0 : index
    %27 = vector.load %arg9[%c0_29, %c0_30] : memref<16x128xf32, #tpu.memory_space<vmem>>, vector<16x128xf32>
    %cst_31 = arith.constant dense<0.000000e+00> : vector<16x128xf32>
    %28 = tpu.matmul %26, %27, %cst_31 {dimension_numbers = #tpu.dot_dimension_numbers<[1], [0], [0], [1], [0, 0, 1, 1], [], []>} : vector<16x16xf32>, vector<16x128xf32>, vector<16x128xf32> -> vector<16x128xf32>
    %c0_32 = arith.constant 0 : index
    %c0_33 = arith.constant 0 : index
    %29 = vector.load %arg8[%c0_32, %c0_33] : memref<128x16xf32, #tpu.memory_space<vmem>>, vector<128x16xf32>
    %cst_34 = arith.constant dense<0.000000e+00> : vector<128x128xf32>
    %30 = tpu.matmul %29, %28, %cst_34 {dimension_numbers = #tpu.dot_dimension_numbers<[1], [0], [0], [1], [0, 0, 1, 1], [], []>} : vector<128x16xf32>, vector<16x128xf32>, vector<128x128xf32> -> vector<128x128xf32>
    %c0_35 = arith.constant 0 : index
    %c0_36 = arith.constant 0 : index
    %c0_37 = arith.constant 0 : index
    %31 = vector.load %arg10[%c0_35, %c0_36, %c0_37] : memref<1x128x128xf32, #tpu.memory_space<vmem>>, vector<1x128x128xf32>
    %32 = vector.shape_cast %31 : vector<1x128x128xf32> to vector<128x128xf32>
    %33 = vector.shape_cast %30 : vector<128x128xf32> to vector<1x128x128xf32>
    tpu.vector_store %arg10[%c0_35, %c0_36, %c0_37], %33 {strides = array<i32>} : memref<1x128x128xf32, #tpu.memory_space<vmem>>, vector<1x128x128xf32>,
    return
  }
  func.func @transform_0(%arg0: i32) -> (i32, i32, i32, i32) {
    %c0_i32 = arith.constant 0 : i32
    %c0_i32_0 = arith.constant 0 : i32
    %c0_i32_1 = arith.constant 0 : i32
    %c0_i32_2 = arith.constant 0 : i32
    return %arg0, %c0_i32, %c0_i32_0, %c0_i32_1 : i32, i32, i32, i32
  }
  func.func @transform_1(%arg0: i32) -> (i32, i32, i32, i32) {
    %c0_i32 = arith.constant 0 : i32
    %c0_i32_0 = arith.constant 0 : i32
    %c0_i32_1 = arith.constant 0 : i32
    %c0_i32_2 = arith.constant 0 : i32
    return %arg0, %c0_i32, %c0_i32_0, %c0_i32_1 : i32, i32, i32, i32
  }
  func.func @transform_2(%arg0: i32) -> (i32, i32, i32, i32) {
    %c0_i32 = arith.constant 0 : i32
    %c0_i32_0 = arith.constant 0 : i32
    %c0_i32_1 = arith.constant 0 : i32
    %c0_i32_2 = arith.constant 0 : i32
    return %arg0, %c0_i32, %c0_i32_0, %c0_i32_1 : i32, i32, i32, i32
  }
  func.func @transform_3(%arg0: i32) -> (i32, i32) {
    %c0_i32 = arith.constant 0 : i32
    %c0_i32_0 = arith.constant 0 : i32
    %c0_i32_1 = arith.constant 0 : i32
    return %c0_i32, %c0_i32_0 : i32, i32
  }
  func.func @transform_4(%arg0: i32) -> (i32, i32) {
    %c0_i32 = arith.constant 0 : i32
    %c0_i32_0 = arith.constant 0 : i32
    %c0_i32_1 = arith.constant 0 : i32
    return %c0_i32, %c0_i32_0 : i32, i32
  }
  func.func @transform_5(%arg0: i32) -> (i32, i32) {
    %c0_i32 = arith.constant 0 : i32
    %c0_i32_0 = arith.constant 0 : i32
    %c0_i32_1 = arith.constant 0 : i32
    return %c0_i32, %c0_i32_0 : i32, i32
  }
  func.func @transform_6(%arg0: i32) -> (i32, i32) {
    %c0_i32 = arith.constant 0 : i32
    %c0_i32_0 = arith.constant 0 : i32
    %c0_i32_1 = arith.constant 0 : i32
    return %c0_i32, %c0_i32_0 : i32, i32
  }
  func.func @transform_7(%arg0: i32) -> (i32, i32) {
    %c0_i32 = arith.constant 0 : i32
    %c0_i32_0 = arith.constant 0 : i32
    %c0_i32_1 = arith.constant 0 : i32
    return %c0_i32, %c0_i32_0 : i32, i32
  }
  func.func @transform_8(%arg0: i32) -> (i32, i32) {
    %c0_i32 = arith.constant 0 : i32
    %c0_i32_0 = arith.constant 0 : i32
    %c0_i32_1 = arith.constant 0 : i32
    return %c0_i32, %c0_i32_0 : i32, i32
  }
  func.func @transform_9(%arg0: i32) -> (i32, i32, i32) {
    %c0_i32 = arith.constant 0 : i32
    %c0_i32_0 = arith.constant 0 : i32
    %c0_i32_1 = arith.constant 0 : i32
    return %arg0, %c0_i32, %c0_i32_0 : i32, i32, i32
  }
}

</mosaic_0001>

<bundles_post_ra>
// kernel: tpu_custom_call.1
= control target key start
LH: loop header
LB: loop body
LE: loop exit
PB: predicated region body
PF: predicated region fallthrough
CT: control target
= control target key end

     0   :  { %14 = vsyncpa [#allocation3], 0  ;;  %s3582_s0 = inlined_call_operand.vmem [shape: f32[2,48,16,16], index: 0, kind: input, shape index: {}]   ;;  %s3583_s1 = inlined_call_operand.vmem [shape: f32[2,96,8,8], index: 1, kind: input, shape index: {}]   ;;  %s3584_s2 = inlined_call_operand.vmem [shape: f32[2,192,4,4], index: 2, kind: input, shape index: {}]   ;;  %s3585_s3 = inlined_call_operand.vmem [shape: f32[16,8], index: 3, kind: input, shape index: {}]   ;;  %s3586_s4 = inlined_call_operand.vmem [shape: f32[8,16], index: 4, kind: input, shape index: {}]   ;;  %s3587_s5 = inlined_call_operand.vmem [shape: f32[16,4], index: 5, kind: input, shape index: {}]   ;;  %s3588_s6 = inlined_call_operand.vmem [shape: f32[4,16], index: 6, kind: input, shape index: {}]   ;;  %s3589_s7 = inlined_call_operand.vmem [shape: f32[128,16], index: 7, kind: input, shape index: {}]   ;;  %s3590_s8 = inlined_call_operand.vmem [shape: f32[16,128], index: 8, kind: input, shape index: {}]   ;;  %s3591_s9 = inlined_call_operand.hbm [shape: f32[2,128,128], index: 9, kind: output, shape index: {}]  }
   0x1   :  { %16 = vsyncpa [#allocation3 + $0x1], 0  ;;  %s2569_s30 = smov 0   ;;  %s2571_s10 = smov 0  }
   0x2   :  { %s2573_s11 = smov 0   ;;  %s2575_s12 = smov 0  }
   0x3 LB: > { %s2590_s13 = sadd.s32 4294967295, %s2512_s12   ;;  %s2265_s14 = sadd.s32 4294967294, %s2512_s12   ;;  %s2512_s12 = sphi %s2575_s12, %s3597_s12   ;;  %s2508_s11 = sphi %s2573_s11, %s3596_s11   ;;  %s2504_s10 = sphi %s2571_s10, %s3595_s10   ;;  %s2500_s30 = sphi %s2569_s30, %s3594_s30  }
   0x4   : > { %s2594_s15 = sadd.s32 1, %s2512_s12   ;;  %s233_s16 = sadd.s32 1, %s2508_s11 }
   0x5   : > { %s230_s17 = ssub.s32 %s2512_s12, %s2594_s15  ;;  %p243_p0 = scmp.ne.s32.totalorder %s2508_s11, %s2504_s10 }
   0x6   : > { %p231_p1 = scmp.eq.s32.totalorder %s230_s17, 0  ;;  %p244_p2 = scmp.eq.s32.totalorder %s2590_s13, 1 }
   0x7   : > { %p249_p3 = scmp.ne.s32.totalorder %s2504_s10, %s2500_s30  ;;  %p250_p4 = scmp.eq.s32.totalorder %s2265_s14, 1 }
   0x8   : > { %s2605_s18 = scalar_select %p231_p1, %s2508_s11, %s233_s16  }
   0x9   : > { %p2607_p5 = por %p244_p2, %p243_p0  ;;  %p2611_p6 = por %p250_p4, %p249_p3 }
   0xa   : > { %p2268_p7 = scmp.ge.s32.totalorder %s2512_s12, 1  ;;  %p310_p8 = scmp.lt.s32.totalorder %s2512_s12, 3 }
   0xc   : > { %p311_p9 = pnand %p2268_p7, %p310_p8 }
   0xd   : > { %v1531_v0 = vld [vmem:[%s3586_s4] sm:$0xff] (!%p311_p9)  ;;  %p356_p10 = scmp.lt.s32.totalorder (!%p311_p9), %s2590_s13, 1  ;;  %v2514_v1 = vmov (!%p311_p9), 0.0   ;;  %vm2515_vm0 = vmmov (!%p311_p9), 0   ;;  %vm757_vm1 = vcmask (!%p311_p9), 64512   ;;  %vm1143_vm2 = vcmask (!%p311_p9), 27648  }
   0xe   : > { %314 = sbr.rel (%p311_p9) target bundleno = 1362 (0x552), region = 56  ;;  %2337 = vmatprep.subr.mxu0 (!%p311_p9), %v2514_v1  ;;  %2339 = vmatprep.mubr.msk.f32.mxu0 (!%p311_p9), %vm2515_vm0, %v2514_v1  ;;  %vm1693_vm3 = vcmask (!%p311_p9), 1043456   ;;  %vm1689_vm4 = vcmask (!%p311_p9), 31744   ;;  %vm467_vm5 = vcmask (!%p311_p9), 130048  }
   0xf   : > { %2338 = vmatpush3.msra.mxu0 (!%p311_p9), %v1531_v0 }
  0x10   : > { %2347 = vmatprep.subr.mxu0 (!%p311_p9), %v2514_v1 }
  0x15   : > { %s357_s23 = scalar_select %p356_p10, %s2590_s13, 1 }
  0x17   : > { %s2626_s24 = smul.u32 768, %s357_s23  ;;  %s2304_s23 = sshll.u32 %s2590_s13, 11 }
  0x18   : > { %s3533_s28 = scalar_lea.hbm %s3591_s9, %s2304_s23 }
  0x19   : > { %s2632_s27 = scalar_lea.vmem %s3583_s1, %s2626_s24  ;;  %s2672_s14 = scalar_lea.vmem %s3584_s2, %s2626_s24 }
  0x1a   : > { %v661_v2 = vld [vmem:[%s2632_s27] sm:$0xff]  ;;  %v662_v3 = vld [vmem:[%s2632_s27 + $0x8] sm:$0xff]  ;;  %v663_v4 = vld [vmem:[%s2632_s27 + $0x10] sm:$0xff]  ;;  %s3243_s17 = scalar_lea.vmem %s3582_s0, %s2626_s24  ;;  %s353_s24 = sand.u32 1, %s2504_s10  }
  0x1b   : > { %v664_v5 = vld [vmem:[%s2632_s27 + $0x18] sm:$0xff]  ;;  %v758_v6 = vsel %vm757_vm1, %v661_v2, 0.0  ;;  %v759_v7 = vsel %vm757_vm1, %v662_v3, 0.0  ;;  %v761_v8 = vsel %vm757_vm1, %v663_v4, 0.0  ;;  %v665_v9 = vld [vmem:[%s2632_s27 + $0x20] sm:$0xff]  ;;  %v666_v12 = vld [vmem:[%s2632_s27 + $0x28] sm:$0xff] }
  0x1c   : > { %v760_v10 = vadd.f32 %v759_v7, %v758_v6  ;;  %v763_v11 = vsel %vm757_vm1, %v664_v5, 0.0  ;;  %v765_v14 = vsel %vm757_vm1, %v665_v9, 0.0  ;;  %v667_v15 = vld [vmem:[%s2632_s27 + $0x30] sm:$0xff]  ;;  %v767_v17 = vsel %vm757_vm1, %v666_v12, 0.0  ;;  %v668_v18 = vld [vmem:[%s2632_s27 + $0x38] sm:$0xff]  ;;  %v669_v21 = vld [vmem:[%s2632_s27 + $0x40] sm:$0xff] }
  0x1d   : > { %v769_v20 = vsel %vm757_vm1, %v667_v15, 0.0  ;;  %v771_v23 = vsel %vm757_vm1, %v668_v18, 0.0  ;;  %v670_v24 = vld [vmem:[%s2632_s27 + $0x48] sm:$0xff]  ;;  %v773_v26 = vsel %vm757_vm1, %v669_v21, 0.0  ;;  %v671_v27 = vld [vmem:[%s2632_s27 + $0x50] sm:$0xff]  ;;  %v672_v30 = vld [vmem:[%s2632_s27 + $0x58] sm:$0xff] }
  0x1e   : > { %v762_v13 = vadd.f32 %v761_v8, %v760_v10  ;;  %v775_v29 = vsel %vm757_vm1, %v670_v24, 0.0  ;;  %v777_v32 = vsel %vm757_vm1, %v671_v27, 0.0  ;;  %v673_v33 = vld [vmem:[%s2632_s27 + $0x60] sm:$0xff]  ;;  %v779_v35 = vsel %vm757_vm1, %v672_v30, 0.0  ;;  %v674_v36 = vld [vmem:[%s2632_s27 + $0x68] sm:$0xff]  ;;  %v675_v39 = vld [vmem:[%s2632_s27 + $0x70] sm:$0xff] }
  0x1f   : > { %v781_v38 = vsel %vm757_vm1, %v673_v33, 0.0  ;;  %v783_v41 = vsel %vm757_vm1, %v674_v36, 0.0  ;;  %v676_v42 = vld [vmem:[%s2632_s27 + $0x78] sm:$0xff]  ;;  %v785_v44 = vsel %vm757_vm1, %v675_v39, 0.0  ;;  %v677_v45 = vld [vmem:[%s2632_s27 + $0x80] sm:$0xff]  ;;  %v678_v48 = vld [vmem:[%s2632_s27 + $0x88] sm:$0xff] }
  0x20   : > { %v764_v16 = vadd.f32 %v763_v11, %v762_v13  ;;  %v787_v47 = vsel %vm757_vm1, %v676_v42, 0.0  ;;  %v789_v50 = vsel %vm757_vm1, %v677_v45, 0.0  ;;  %v679_v51 = vld [vmem:[%s2632_s27 + $0x90] sm:$0xff]  ;;  %v791_v53 = vsel %vm757_vm1, %v678_v48, 0.0  ;;  %v680_v54 = vld [vmem:[%s2632_s27 + $0x98] sm:$0xff]  ;;  %v681_v59 = vld [vmem:[%s2632_s27 + $0xa0] sm:$0xff] }
  0x21   : > { %v951_v56 = vld [vmem:[%s2672_s14] sm:$0xf]  ;;  %v793_v57 = vsel %vm757_vm1, %v679_v51, 0.0  ;;  %v952_v58 = vld [vmem:[%s2672_s14 + $0x4] sm:$0xf]  ;;  %v795_v62 = vsel %vm757_vm1, %v680_v54, 0.0 }
  0x22   : > { %v766_v19 = vadd.f32 %v765_v14, %v764_v16  ;;  %v1144_v61 = vsel %vm1143_vm2, %v951_v56, 0.0  ;;  %v953_v63 = vld [vmem:[%s2672_s14 + $0x8] sm:$0xf]  ;;  %v1145_v3 = vsel %vm1143_vm2, %v952_v58, 0.0  ;;  %v797_v4 = vsel %vm757_vm1, %v681_v59, 0.0  ;;  %v683_v7 = vld [vmem:[%s2632_s27 + $0xb0] sm:$0xff] }
  0x23   : > { %v682_v0 = vld [vmem:[%s2632_s27 + $0xa8] sm:$0xff]  ;;  %v1146_v6 = vadd.f32 %v1145_v3, %v1144_v61  ;;  %v1147_v9 = vsel %vm1143_vm2, %v953_v63, 0.0  ;;  %v955_v11 = vld [vmem:[%s2672_s14 + $0x10] sm:$0xf]  ;;  %v684_v13 = vld [vmem:[%s2632_s27 + $0xb8] sm:$0xff]  ;;  %v801_v16 = vsel %vm757_vm1, %v683_v7, 0.0 }
  0x24   : > { %v768_v22 = vadd.f32 %v767_v17, %v766_v19  ;;  %v954_v5 = vld [vmem:[%s2672_s14 + $0xc] sm:$0xf]  ;;  %v799_v10 = vsel %vm757_vm1, %v682_v0, 0.0  ;;  %v956_v17 = vld [vmem:[%s2672_s14 + $0x14] sm:$0xf]  ;;  %v685_v19 = vld [vmem:[%s2632_s27 + $0xc0] sm:$0xff] }
  0x25   : > { %v1148_v12 = vadd.f32 %v1147_v9, %v1146_v6  ;;  %v1149_v15 = vsel %vm1143_vm2, %v954_v5, 0.0  ;;  %v1151_v21 = vsel %vm1143_vm2, %v955_v11, 0.0  ;;  %v1153_v27 = vsel %vm1143_vm2, %v956_v17, 0.0  ;;  %v689_v42 = vld [vmem:[%s2632_s27 + $0xe0] sm:$0xff]  ;;  %v961_v54 = vld [vmem:[%s2672_s14 + $0x28] sm:$0xf] }
  0x26   : > { %v770_v25 = vadd.f32 %v769_v20, %v768_v22  ;;  %v803_v22 = vsel %vm757_vm1, %v684_v13, 0.0  ;;  %v692_v56 = vld [vmem:[%s2632_s27 + $0xf8] sm:$0xff]  ;;  %v693_v61 = vld [vmem:[%s2632_s27 + $0x100] sm:$0xff]  ;;  %v962_v63 = vld [vmem:[%s2672_s14 + $0x2c] sm:$0xf]  ;;  %s2269_s21 = sshll.u32 %s353_s24, 7 }
  0x27   : > { %v1150_v18 = vadd.f32 %v1149_v15, %v1148_v12  ;;  %v819_v0 = vsel %vm757_vm1, %v692_v56, 0.0  ;;  %v821_v5 = vsel %vm757_vm1, %v693_v61, 0.0  ;;  %v1165_v6 = vsel %vm1143_vm2, %v962_v63, 0.0  ;;  %v695_v7 = vld [vmem:[%s2632_s27 + $0x110] sm:$0xff]  ;;  %v696_v11 = vld [vmem:[%s2632_s27 + $0x118] sm:$0xff]  ;;  %v706_v56 = vld [vmem:[%s2632_s27 + $0x168] sm:$0xff] }
  0x28   : > { %v772_v28 = vadd.f32 %v771_v23, %v770_v25  ;;  %v957_v23 = vld [vmem:[%s2672_s14 + $0x18] sm:$0xf]  ;;  %v686_v25 = vld [vmem:[%s2632_s27 + $0xc8] sm:$0xff]  ;;  %v963_v9 = vld [vmem:[%s2672_s14 + $0x30] sm:$0xf]  ;;  %s3512_s22 = scalar_lea.vmem [#allocation2], %s2269_s21 }
  0x29   : > { %v1152_v24 = vadd.f32 %v1151_v21, %v1150_v18  ;;  %v1155_v33 = vsel %vm1143_vm2, %v957_v23, 0.0  ;;  %v1167_v15 = vsel %vm1143_vm2, %v963_v9, 0.0  ;;  %v964_v18 = vld [vmem:[%s2672_s14 + $0x34] sm:$0xf]  ;;  %v969_v63 = vld [vmem:[%s2672_s14 + $0x48] sm:$0xf] }
  0x2a   : > { %v774_v31 = vadd.f32 %v773_v26, %v772_v28  ;;  %v805_v28 = vsel %vm757_vm1, %v685_v19, 0.0  ;;  %v827_v19 = vsel %vm757_vm1, %v696_v11, 0.0  ;;  %v707_v61 = vld [vmem:[%s2632_s27 + $0x170] sm:$0xff]  ;;  %v970_v9 = vld [vmem:[%s2672_s14 + $0x4c] sm:$0xf]  ;;  %s2179_s25 = sshll.u32 %s3512_s22, 4  ;;  %s3535_s25 = int_to_ptr.vmem [resolvable:$true] %s2179_s25 }
  0x2b   : > { %v1154_v30 = vadd.f32 %v1153_v27, %v1152_v24  ;;  %v1169_v24 = vsel %vm1143_vm2, %v964_v18, 0.0  ;;  %v965_v27 = vld [vmem:[%s2672_s14 + $0x38] sm:$0xf]  ;;  %v710_v11 = vld [vmem:[%s2632_s27 + $0x188] sm:$0xff]  ;;  %v971_v18 = vld [vmem:[%s2672_s14 + $0x50] sm:$0xf] }
  0x2c   : > { %v776_v34 = vadd.f32 %v775_v29, %v774_v31  ;;  %v958_v29 = vld [vmem:[%s2672_s14 + $0x1c] sm:$0xf]  ;;  %v687_v31 = vld [vmem:[%s2632_s27 + $0xd0] sm:$0xff]  ;;  %s3541_s13 = scalar_lea.sflag [#allocation3], %s353_s24  ;;  %s2450_s29 = scalar_lea.vmem %s3535_s25, 2048 }
  0x2d   : > { %v1156_v36 = vadd.f32 %v1155_v33, %v1154_v30  ;;  %v1157_v39 = vsel %vm1143_vm2, %v958_v29, 0.0  ;;  %v700_v29 = vld [vmem:[%s2632_s27 + $0x138] sm:$0xff]  ;;  %v1171_v33 = vsel %vm1143_vm2, %v965_v27, 0.0  ;;  %p2451_p11 = scmp.ne.s32.totalorder %s3535_s25, %s2450_s29 }
  0x2e   : > { %v778_v37 = vadd.f32 %v777_v32, %v776_v34  ;;  %v807_v34 = vsel %vm757_vm1, %v686_v25, 0.0  ;;  %v699_v25 = vld [vmem:[%s2632_s27 + $0x130] sm:$0xff] }
  0x2f   : > { %p2452_p12 = pnand %p2451_p11, %p2607_p5 }
  0x30   : > { %v780_v40 = vadd.f32 %v779_v35, %v778_v37  ;;  %v959_v35 = vld [vmem:[%s2672_s14 + $0x20] sm:$0xf]  ;;  %v688_v37 = vld [vmem:[%s2632_s27 + $0xd8] sm:$0xff] }
  0x31   : > { %v1159_v45 = vsel %vm1143_vm2, %v959_v35, 0.0  ;;  %p2453_p13 = pneg %p2452_p12 }
  0x32   : > { %v782_v43 = vadd.f32 %v781_v38, %v780_v40  ;;  %v809_v40 = vsel %vm757_vm1, %v687_v31, 0.0 }
  0x34   : > { %v784_v46 = vadd.f32 %v783_v41, %v782_v43  ;;  %v1158_v41 = vadd.f32 %v1157_v39, %v1156_v36  ;;  %v966_v36 = vld [vmem:[%s2672_s14 + $0x3c] sm:$0xf] }
  0x36   : > { %v786_v49 = vadd.f32 %v785_v44, %v784_v46  ;;  %v960_v44 = vld [vmem:[%s2672_s14 + $0x24] sm:$0xf]  ;;  %v811_v46 = vsel %vm757_vm1, %v688_v37, 0.0  ;;  %v835_v37 = vsel %vm757_vm1, %v700_v29, 0.0 }
  0x37   : > { %v1161_v51 = vsel %vm1143_vm2, %v960_v44, 0.0 }
  0x38   : > { %v788_v52 = vadd.f32 %v787_v47, %v786_v49  ;;  %v690_v47 = vld [vmem:[%s2632_s27 + $0xe8] sm:$0xff]  ;;  %v1160_v49 = vadd.f32 %v1159_v45, %v1158_v41  ;;  %v967_v45 = vld [vmem:[%s2672_s14 + $0x40] sm:$0xf] }
  0x3a   : > { %v790_v55 = vadd.f32 %v789_v50, %v788_v52  ;;  %v813_v50 = vsel %vm757_vm1, %v689_v42, 0.0  ;;  %v691_v52 = vld [vmem:[%s2632_s27 + $0xf0] sm:$0xff]  ;;  %v1162_v58 = vadd.f32 %v1161_v51, %v1160_v49  ;;  %v1173_v42 = vsel %vm1143_vm2, %v966_v36, 0.0  ;;  %v974_v36 = vld [vmem:[%s2672_s14 + $0x5c] sm:$0xf] }
  0x3b   : > { %v817_v59 = vsel %vm757_vm1, %v691_v52, 0.0  ;;  %v1175_v51 = vsel %vm1143_vm2, %v967_v45, 0.0  ;;  %v705_v52 = vld [vmem:[%s2632_s27 + $0x160] sm:$0xff]  ;;  %v1189_v45 = vsel %vm1143_vm2, %v974_v36, 0.0 }
  0x3c   : > { %v792_v60 = vadd.f32 %v791_v53, %v790_v55  ;;  %v815_v55 = vsel %vm757_vm1, %v690_v47, 0.0  ;;  %v704_v47 = vld [vmem:[%s2632_s27 + $0x158] sm:$0xff] }
  0x3e   : > { %v794_v2 = vadd.f32 %v793_v57, %v792_v60  ;;  %v1163_v60 = vsel %vm1143_vm2, %v961_v54, 0.0  ;;  %v968_v54 = vld [vmem:[%s2672_s14 + $0x44] sm:$0xf] }
  0x40   : > { %v796_v8 = vadd.f32 %v795_v62, %v794_v2  ;;  %v694_v2 = vld [vmem:[%s2632_s27 + $0x108] sm:$0xff] }
  0x42   : > { %v798_v14 = vadd.f32 %v797_v4, %v796_v8  ;;  %v1164_v4 = vadd.f32 %v1163_v60, %v1162_v58  ;;  %v1177_v60 = vsel %vm1143_vm2, %v968_v54, 0.0  ;;  %v977_v54 = vld [vmem:[%s2672_s14 + $0x68] sm:$0xf] }
  0x44   : > { %v800_v20 = vadd.f32 %v799_v10, %v798_v14  ;;  %v823_v10 = vsel %vm757_vm1, %v694_v2, 0.0  ;;  %v1166_v13 = vadd.f32 %v1165_v6, %v1164_v4  ;;  %v825_v14 = vsel %vm757_vm1, %v695_v7, 0.0  ;;  %v708_v2 = vld [vmem:[%s2632_s27 + $0x178] sm:$0xff]  ;;  %v709_v7 = vld [vmem:[%s2632_s27 + $0x180] sm:$0xff] }
  0x45   : > { %v1179_v6 = vsel %vm1143_vm2, %v969_v63, 0.0  ;;  %v1195_v63 = vsel %vm1143_vm2, %v977_v54, 0.0 }
  0x46   : > { %v802_v26 = vadd.f32 %v801_v16, %v800_v20  ;;  %v697_v16 = vld [vmem:[%s2632_s27 + $0x120] sm:$0xff]  ;;  %v698_v20 = vld [vmem:[%s2632_s27 + $0x128] sm:$0xff] }
  0x47   : > { %v829_v23 = vsel %vm757_vm1, %v697_v16, 0.0  ;;  %v711_v16 = vld [vmem:[%s2632_s27 + $0x190] sm:$0xff] }
  0x48   : > { %v804_v32 = vadd.f32 %v803_v22, %v802_v26  ;;  %v1168_v22 = vadd.f32 %v1167_v15, %v1166_v13  ;;  %v1181_v15 = vsel %vm1143_vm2, %v970_v9, 0.0  ;;  %v980_v9 = vld [vmem:[%s2672_s14 + $0x74] sm:$0xf] }
  0x4a   : > { %v806_v38 = vadd.f32 %v805_v28, %v804_v32  ;;  %v831_v28 = vsel %vm757_vm1, %v698_v20, 0.0  ;;  %v1170_v31 = vadd.f32 %v1169_v24, %v1168_v22  ;;  %v833_v32 = vsel %vm757_vm1, %v699_v25, 0.0  ;;  %v712_v20 = vld [vmem:[%s2632_s27 + $0x198] sm:$0xff]  ;;  %v713_v25 = vld [vmem:[%s2632_s27 + $0x1a0] sm:$0xff] }
  0x4b   : > { %v1183_v24 = vsel %vm1143_vm2, %v971_v18, 0.0  ;;  %v859_v27 = vsel %vm757_vm1, %v712_v20, 0.0  ;;  %v1201_v18 = vsel %vm1143_vm2, %v980_v9, 0.0 }
  0x4c   : > { %v808_v43 = vadd.f32 %v807_v34, %v806_v38  ;;  %v701_v34 = vld [vmem:[%s2632_s27 + $0x140] sm:$0xff]  ;;  %v702_v38 = vld [vmem:[%s2632_s27 + $0x148] sm:$0xff] }
  0x4d   : > { %v837_v41 = vsel %vm757_vm1, %v701_v34, 0.0  ;;  %v715_v34 = vld [vmem:[%s2632_s27 + $0x1b0] sm:$0xff] }
  0x4e   : > { %v810_v48 = vadd.f32 %v809_v40, %v808_v43  ;;  %v1172_v40 = vadd.f32 %v1171_v33, %v1170_v31  ;;  %v703_v43 = vld [vmem:[%s2632_s27 + $0x150] sm:$0xff]  ;;  %v973_v31 = vld [vmem:[%s2672_s14 + $0x58] sm:$0xf]  ;;  %v861_v33 = vsel %vm757_vm1, %v713_v25, 0.0 }
  0x4f   : > { %v724_v25 = vld [vmem:[%s2632_s27 + $0x1f8] sm:$0xff] }
  0x50   : > { %v812_v53 = vadd.f32 %v811_v46, %v810_v48  ;;  %v839_v46 = vsel %vm757_vm1, %v702_v38, 0.0  ;;  %v1174_v49 = vadd.f32 %v1173_v42, %v1172_v40  ;;  %v716_v40 = vld [vmem:[%s2632_s27 + $0x1b8] sm:$0xff]  ;;  %v975_v42 = vld [vmem:[%s2672_s14 + $0x60] sm:$0xf] }
  0x52   : > { %v814_v57 = vadd.f32 %v813_v50, %v812_v53  ;;  %v841_v50 = vsel %vm757_vm1, %v703_v43, 0.0  ;;  %v1176_v58 = vadd.f32 %v1175_v51, %v1174_v49  ;;  %v1191_v51 = vsel %vm1143_vm2, %v975_v42, 0.0 }
  0x54   : > { %v816_v62 = vadd.f32 %v815_v55, %v814_v57  ;;  %v843_v55 = vsel %vm757_vm1, %v704_v47, 0.0  ;;  %v1178_v4 = vadd.f32 %v1177_v60, %v1176_v58  ;;  %v719_v58 = vld [vmem:[%s2632_s27 + $0x1d0] sm:$0xff]  ;;  %v978_v60 = vld [vmem:[%s2672_s14 + $0x6c] sm:$0xf] }
  0x56   : > { %v818_v3 = vadd.f32 %v817_v59, %v816_v62  ;;  %v845_v59 = vsel %vm757_vm1, %v705_v52, 0.0  ;;  %v1180_v13 = vadd.f32 %v1179_v6, %v1178_v4  ;;  %v718_v52 = vld [vmem:[%s2632_s27 + $0x1c8] sm:$0xff]  ;;  %v1197_v6 = vsel %vm1143_vm2, %v978_v60, 0.0 }
  0x58   : > { %v820_v8 = vadd.f32 %v819_v0, %v818_v3  ;;  %v847_v0 = vsel %vm757_vm1, %v706_v56, 0.0  ;;  %v1182_v22 = vadd.f32 %v1181_v15, %v1180_v13  ;;  %v722_v13 = vld [vmem:[%s2632_s27 + $0x1e8] sm:$0xff]  ;;  %v981_v15 = vld [vmem:[%s2672_s14 + $0x78] sm:$0xf] }
  0x5a   : > { %v822_v12 = vadd.f32 %v821_v5, %v820_v8  ;;  %v849_v5 = vsel %vm757_vm1, %v707_v61, 0.0 }
  0x5c   : > { %v824_v17 = vadd.f32 %v823_v10, %v822_v12  ;;  %v851_v10 = vsel %vm757_vm1, %v708_v2, 0.0 }
  0x5e   : > { %v826_v21 = vadd.f32 %v825_v14, %v824_v17  ;;  %v853_v14 = vsel %vm757_vm1, %v709_v7, 0.0  ;;  %v721_v7 = vld [vmem:[%s2632_s27 + $0x1e0] sm:$0xff] }
  0x60   : > { %v828_v26 = vadd.f32 %v827_v19, %v826_v21  ;;  %v855_v19 = vsel %vm757_vm1, %v710_v11, 0.0 }
  0x62   : > { %v830_v30 = vadd.f32 %v829_v23, %v828_v26  ;;  %v857_v23 = vsel %vm757_vm1, %v711_v16, 0.0 }
  0x64   : > { %v832_v35 = vadd.f32 %v831_v28, %v830_v30  ;;  %v714_v28 = vld [vmem:[%s2632_s27 + $0x1a8] sm:$0xff]  ;;  %v972_v30 = vld [vmem:[%s2672_s14 + $0x54] sm:$0xf] }
  0x65   : > { %v1185_v38 = vsel %vm1143_vm2, %v972_v30, 0.0 }
  0x66   : > { %v834_v39 = vadd.f32 %v833_v32, %v832_v35  ;;  %v1184_v32 = vadd.f32 %v1183_v24, %v1182_v22  ;;  %v1203_v24 = vsel %vm1143_vm2, %v981_v15, 0.0 }
  0x68   : > { %v836_v44 = vadd.f32 %v835_v37, %v834_v39  ;;  %v863_v37 = vsel %vm757_vm1, %v714_v28, 0.0  ;;  %v1187_v39 = vsel %vm1143_vm2, %v973_v31, 0.0  ;;  %v1186_v43 = vadd.f32 %v1185_v38, %v1184_v32  ;;  %v725_v31 = vld [vmem:[%s2632_s27 + $0x200] sm:$0xff] }
  0x6a   : > { %v838_v48 = vadd.f32 %v837_v41, %v836_v44  ;;  %v865_v44 = vsel %vm757_vm1, %v715_v34, 0.0  ;;  %v1188_v49 = vadd.f32 %v1187_v39, %v1186_v43  ;;  %v985_v39 = vld [vmem:[%s2672_s14 + $0x88] sm:$0xf]  ;;  %v727_v43 = vld [vmem:[%s2632_s27 + $0x210] sm:$0xff] }
  0x6c   : > { %v840_v53 = vadd.f32 %v839_v46, %v838_v48  ;;  %v717_v46 = vld [vmem:[%s2632_s27 + $0x1c0] sm:$0xff] }
  0x6d   : > { %v976_v48 = vld [vmem:[%s2672_s14 + $0x64] sm:$0xf]  ;;  %v869_v56 = vsel %vm757_vm1, %v717_v46, 0.0 }
  0x6e   : > { %v842_v57 = vadd.f32 %v841_v50, %v840_v53  ;;  %v867_v50 = vsel %vm757_vm1, %v716_v40, 0.0 }
  0x70   : > { %v844_v62 = vadd.f32 %v843_v55, %v842_v57  ;;  %v1190_v55 = vadd.f32 %v1189_v45, %v1188_v49  ;;  %v1193_v57 = vsel %vm1143_vm2, %v976_v48, 0.0  ;;  %v986_v45 = vld [vmem:[%s2672_s14 + $0x8c] sm:$0xf]  ;;  %v1211_v48 = vsel %vm1143_vm2, %v985_v39, 0.0  ;;  %v728_v49 = vld [vmem:[%s2632_s27 + $0x218] sm:$0xff] }
  0x71   : > { %v1213_v54 = vsel %vm1143_vm2, %v986_v45, 0.0 }
  0x72   : > { %v846_v3 = vadd.f32 %v845_v59, %v844_v62  ;;  %v1192_v61 = vadd.f32 %v1191_v51, %v1190_v55  ;;  %v871_v62 = vsel %vm757_vm1, %v718_v52, 0.0  ;;  %v987_v51 = vld [vmem:[%s2672_s14 + $0x90] sm:$0xf]  ;;  %v729_v55 = vld [vmem:[%s2632_s27 + $0x220] sm:$0xff] }
  0x73   : > { %v1215_v60 = vsel %vm1143_vm2, %v987_v51, 0.0 }
  0x74   : > { %v848_v8 = vadd.f32 %v847_v0, %v846_v3  ;;  %v720_v0 = vld [vmem:[%s2632_s27 + $0x1d8] sm:$0xff]  ;;  %v979_v3 = vld [vmem:[%s2672_s14 + $0x70] sm:$0xf]  ;;  %v1194_v4 = vadd.f32 %v1193_v57, %v1192_v61  ;;  %v988_v57 = vld [vmem:[%s2672_s14 + $0x94] sm:$0xf] }
  0x75   : > { %v875_v11 = vsel %vm757_vm1, %v720_v0, 0.0  ;;  %v730_v61 = vld [vmem:[%s2632_s27 + $0x228] sm:$0xff] }
  0x76   : > { %v850_v12 = vadd.f32 %v849_v5, %v848_v8  ;;  %v873_v5 = vsel %vm757_vm1, %v719_v58, 0.0 }
  0x78   : > { %v852_v17 = vadd.f32 %v851_v10, %v850_v12  ;;  %v1196_v10 = vadd.f32 %v1195_v63, %v1194_v4  ;;  %v1199_v12 = vsel %vm1143_vm2, %v979_v3, 0.0  ;;  %v989_v63 = vld [vmem:[%s2672_s14 + $0x98] sm:$0xf]  ;;  %v1217_v3 = vsel %vm1143_vm2, %v988_v57, 0.0  ;;  %v731_v4 = vld [vmem:[%s2632_s27 + $0x230] sm:$0xff] }
  0x79   : > { %v1219_v9 = vsel %vm1143_vm2, %v989_v63, 0.0 }
  0x7a   : > { %v854_v21 = vadd.f32 %v853_v14, %v852_v17  ;;  %v1198_v16 = vadd.f32 %v1197_v6, %v1196_v10  ;;  %v877_v17 = vsel %vm757_vm1, %v721_v7, 0.0  ;;  %v990_v6 = vld [vmem:[%s2672_s14 + $0x9c] sm:$0xf] }
  0x7b   : > { %v732_v10 = vld [vmem:[%s2632_s27 + $0x238] sm:$0xff]  ;;  %v1221_v15 = vsel %vm1143_vm2, %v990_v6, 0.0 }
  0x7c   : > { %v856_v26 = vadd.f32 %v855_v19, %v854_v21  ;;  %v723_v19 = vld [vmem:[%s2632_s27 + $0x1f0] sm:$0xff]  ;;  %v982_v21 = vld [vmem:[%s2672_s14 + $0x7c] sm:$0xf]  ;;  %v1200_v22 = vadd.f32 %v1199_v12, %v1198_v16  ;;  %v991_v12 = vld [vmem:[%s2672_s14 + $0xa0] sm:$0xf] }
  0x7d   : > { %v1205_v30 = vsel %vm1143_vm2, %v982_v21, 0.0  ;;  %v733_v16 = vld [vmem:[%s2632_s27 + $0x240] sm:$0xff]  ;;  %v1223_v21 = vsel %vm1143_vm2, %v991_v12, 0.0 }
  0x7e   : > { %v858_v29 = vadd.f32 %v857_v23, %v856_v26  ;;  %v879_v23 = vsel %vm757_vm1, %v722_v13, 0.0  ;;  %v1202_v28 = vadd.f32 %v1201_v18, %v1200_v22  ;;  %v992_v18 = vld [vmem:[%s2672_s14 + $0xa4] sm:$0xf]  ;;  %v734_v22 = vld [vmem:[%s2632_s27 + $0x248] sm:$0xff] }
  0x80   : > { %v860_v35 = vadd.f32 %v859_v27, %v858_v29  ;;  %v983_v27 = vld [vmem:[%s2672_s14 + $0x80] sm:$0xf]  ;;  %v881_v29 = vsel %vm757_vm1, %v723_v19, 0.0  ;;  %v1204_v34 = vadd.f32 %v1203_v24, %v1202_v28  ;;  %v993_v24 = vld [vmem:[%s2672_s14 + $0xa8] sm:$0xf]  ;;  %v735_v28 = vld [vmem:[%s2632_s27 + $0x250] sm:$0xff] }
  0x81   : > { %v1207_v36 = vsel %vm1143_vm2, %v983_v27, 0.0  ;;  %v1225_v27 = vsel %vm1143_vm2, %v992_v18, 0.0 }
  0x82   : > { %v862_v41 = vadd.f32 %v861_v33, %v860_v35  ;;  %v984_v33 = vld [vmem:[%s2672_s14 + $0x84] sm:$0xf]  ;;  %v883_v35 = vsel %vm757_vm1, %v724_v25, 0.0  ;;  %v1206_v40 = vadd.f32 %v1205_v30, %v1204_v34  ;;  %v994_v30 = vld [vmem:[%s2672_s14 + $0xac] sm:$0xf]  ;;  %v736_v34 = vld [vmem:[%s2632_s27 + $0x258] sm:$0xff] }
  0x83   : > { %v1209_v42 = vsel %vm1143_vm2, %v984_v33, 0.0  ;;  %v1227_v33 = vsel %vm1143_vm2, %v993_v24, 0.0  ;;  %v1229_v39 = vsel %vm1143_vm2, %v994_v30, 0.0 }
  0x84   : > { %v864_v47 = vadd.f32 %v863_v37, %v862_v41  ;;  %v726_v37 = vld [vmem:[%s2632_s27 + $0x208] sm:$0xff]  ;;  %v885_v41 = vsel %vm757_vm1, %v725_v31, 0.0  ;;  %v1208_v46 = vadd.f32 %v1207_v36, %v1206_v40  ;;  %v995_v36 = vld [vmem:[%s2672_s14 + $0xb0] sm:$0xf]  ;;  %v737_v40 = vld [vmem:[%s2632_s27 + $0x260] sm:$0xff] }
  0x85   : > { %v1231_v45 = vsel %vm1143_vm2, %v995_v36, 0.0 }
  0x86   : > { %v866_v53 = vadd.f32 %v865_v44, %v864_v47  ;;  %v887_v47 = vsel %vm757_vm1, %v726_v37, 0.0  ;;  %v1210_v52 = vadd.f32 %v1209_v42, %v1208_v46  ;;  %v996_v42 = vld [vmem:[%s2672_s14 + $0xb4] sm:$0xf]  ;;  %v738_v46 = vld [vmem:[%s2632_s27 + $0x268] sm:$0xff] }
  0x87   : > { %v1233_v51 = vsel %vm1143_vm2, %v996_v42, 0.0 }
  0x88   : > { %v868_v59 = vadd.f32 %v867_v50, %v866_v53  ;;  %v889_v53 = vsel %vm757_vm1, %v727_v43, 0.0  ;;  %v1212_v58 = vadd.f32 %v1211_v48, %v1210_v52  ;;  %v997_v48 = vld [vmem:[%s2672_s14 + $0xb8] sm:$0xf]  ;;  %v739_v52 = vld [vmem:[%s2632_s27 + $0x270] sm:$0xff] }
  0x89   : > { %v1235_v57 = vsel %vm1143_vm2, %v997_v48, 0.0 }
  0x8a   : > { %v870_v2 = vadd.f32 %v869_v56, %v868_v59  ;;  %v891_v59 = vsel %vm757_vm1, %v728_v49, 0.0  ;;  %v1214_v0 = vadd.f32 %v1213_v54, %v1212_v58  ;;  %v998_v54 = vld [vmem:[%s2672_s14 + $0xbc] sm:$0xf] }
  0x8b   : > { %v740_v58 = vld [vmem:[%s2632_s27 + $0x278] sm:$0xff]  ;;  %v1237_v63 = vsel %vm1143_vm2, %v998_v54, 0.0 }
  0x8c   : > { %v872_v8 = vadd.f32 %v871_v62, %v870_v2  ;;  %v893_v2 = vsel %vm757_vm1, %v729_v55, 0.0  ;;  %v1216_v7 = vadd.f32 %v1215_v60, %v1214_v0  ;;  %v999_v60 = vld [vmem:[%s2672_s14 + $0xc0] sm:$0xf] }
  0x8d   : > { %v741_v0 = vld [vmem:[%s2632_s27 + $0x280] sm:$0xff]  ;;  %v1239_v6 = vsel %vm1143_vm2, %v999_v60, 0.0 }
  0x8e   : > { %v874_v14 = vadd.f32 %v873_v5, %v872_v8  ;;  %v895_v8 = vsel %vm757_vm1, %v730_v61, 0.0  ;;  %v1218_v13 = vadd.f32 %v1217_v3, %v1216_v7  ;;  %v1000_v3 = vld [vmem:[%s2672_s14 + $0xc4] sm:$0xf]  ;;  %v742_v7 = vld [vmem:[%s2632_s27 + $0x288] sm:$0xff] }
  0x8f   : > { %v1241_v12 = vsel %vm1143_vm2, %v1000_v3, 0.0 }
  0x90   : > { %v876_v20 = vadd.f32 %v875_v11, %v874_v14  ;;  %v897_v14 = vsel %vm757_vm1, %v731_v4, 0.0  ;;  %v1220_v19 = vadd.f32 %v1219_v9, %v1218_v13  ;;  %v1001_v9 = vld [vmem:[%s2672_s14 + $0xc8] sm:$0xf]  ;;  %v743_v13 = vld [vmem:[%s2632_s27 + $0x290] sm:$0xff] }
  0x91   : > { %v1243_v18 = vsel %vm1143_vm2, %v1001_v9, 0.0 }
  0x92   : > { %v878_v26 = vadd.f32 %v877_v17, %v876_v20  ;;  %v899_v20 = vsel %vm757_vm1, %v732_v10, 0.0  ;;  %v1222_v25 = vadd.f32 %v1221_v15, %v1220_v19  ;;  %v1002_v15 = vld [vmem:[%s2672_s14 + $0xcc] sm:$0xf]  ;;  %v744_v19 = vld [vmem:[%s2632_s27 + $0x298] sm:$0xff] }
  0x93   : > { %v1245_v24 = vsel %vm1143_vm2, %v1002_v15, 0.0 }
  0x94   : > { %v880_v32 = vadd.f32 %v879_v23, %v878_v26  ;;  %v901_v26 = vsel %vm757_vm1, %v733_v16, 0.0  ;;  %v1224_v31 = vadd.f32 %v1223_v21, %v1222_v25  ;;  %v1003_v21 = vld [vmem:[%s2672_s14 + $0xd0] sm:$0xf]  ;;  %v745_v25 = vld [vmem:[%s2632_s27 + $0x2a0] sm:$0xff] }
  0x95   : > { %v1247_v30 = vsel %vm1143_vm2, %v1003_v21, 0.0 }
  0x96   : > { %v882_v38 = vadd.f32 %v881_v29, %v880_v32  ;;  %v903_v32 = vsel %vm757_vm1, %v734_v22, 0.0  ;;  %v1226_v37 = vadd.f32 %v1225_v27, %v1224_v31  ;;  %v1004_v27 = vld [vmem:[%s2672_s14 + $0xd4] sm:$0xf]  ;;  %v746_v31 = vld [vmem:[%s2632_s27 + $0x2a8] sm:$0xff] }
  0x97   : > { %v1249_v36 = vsel %vm1143_vm2, %v1004_v27, 0.0 }
  0x98   : > { %v884_v44 = vadd.f32 %v883_v35, %v882_v38  ;;  %v905_v38 = vsel %vm757_vm1, %v735_v28, 0.0  ;;  %v1228_v43 = vadd.f32 %v1227_v33, %v1226_v37  ;;  %v1005_v33 = vld [vmem:[%s2672_s14 + $0xd8] sm:$0xf]  ;;  %v747_v37 = vld [vmem:[%s2632_s27 + $0x2b0] sm:$0xff] }
  0x99   : > { %v1251_v42 = vsel %vm1143_vm2, %v1005_v33, 0.0 }
  0x9a   : > { %v886_v50 = vadd.f32 %v885_v41, %v884_v44  ;;  %v907_v44 = vsel %vm757_vm1, %v736_v34, 0.0  ;;  %v1230_v49 = vadd.f32 %v1229_v39, %v1228_v43  ;;  %v1006_v39 = vld [vmem:[%s2672_s14 + $0xdc] sm:$0xf] }
  0x9b   : > { %v748_v43 = vld [vmem:[%s2632_s27 + $0x2b8] sm:$0xff]  ;;  %v1253_v48 = vsel %vm1143_vm2, %v1006_v39, 0.0 }
  0x9c   : > { %v888_v56 = vadd.f32 %v887_v47, %v886_v50  ;;  %v909_v50 = vsel %vm757_vm1, %v737_v40, 0.0  ;;  %v1232_v55 = vadd.f32 %v1231_v45, %v1230_v49  ;;  %v1007_v45 = vld [vmem:[%s2672_s14 + $0xe0] sm:$0xf] }
  0x9d   : > { %v749_v49 = vld [vmem:[%s2632_s27 + $0x2c0] sm:$0xff]  ;;  %v1255_v54 = vsel %vm1143_vm2, %v1007_v45, 0.0 }
  0x9e   : > { %v890_v62 = vadd.f32 %v889_v53, %v888_v56  ;;  %v911_v56 = vsel %vm757_vm1, %v738_v46, 0.0  ;;  %v1234_v61 = vadd.f32 %v1233_v51, %v1232_v55  ;;  %v1008_v51 = vld [vmem:[%s2672_s14 + $0xe4] sm:$0xf]  ;;  %v750_v55 = vld [vmem:[%s2632_s27 + $0x2c8] sm:$0xff] }
  0x9f   : > { %v1257_v60 = vsel %vm1143_vm2, %v1008_v51, 0.0 }
  0xa0   : > { %v892_v5 = vadd.f32 %v891_v59, %v890_v62  ;;  %v913_v62 = vsel %vm757_vm1, %v739_v52, 0.0  ;;  %v1236_v4 = vadd.f32 %v1235_v57, %v1234_v61  ;;  %v1009_v57 = vld [vmem:[%s2672_s14 + $0xe8] sm:$0xf]  ;;  %v751_v61 = vld [vmem:[%s2632_s27 + $0x2d0] sm:$0xff] }
  0xa1   : > { %v1259_v3 = vsel %vm1143_vm2, %v1009_v57, 0.0 }
  0xa2   : > { %v894_v11 = vadd.f32 %v893_v2, %v892_v5  ;;  %v915_v5 = vsel %vm757_vm1, %v740_v58, 0.0  ;;  %v1238_v10 = vadd.f32 %v1237_v63, %v1236_v4  ;;  %v1010_v63 = vld [vmem:[%s2672_s14 + $0xec] sm:$0xf]  ;;  %v752_v4 = vld [vmem:[%s2632_s27 + $0x2d8] sm:$0xff] }
  0xa3   : > { %v1261_v9 = vsel %vm1143_vm2, %v1010_v63, 0.0 }
  0xa4   : > { %v896_v17 = vadd.f32 %v895_v8, %v894_v11  ;;  %v917_v11 = vsel %vm757_vm1, %v741_v0, 0.0  ;;  %v1240_v16 = vadd.f32 %v1239_v6, %v1238_v10  ;;  %v1011_v6 = vld [vmem:[%s2672_s14 + $0xf0] sm:$0xf]  ;;  %v753_v10 = vld [vmem:[%s2632_s27 + $0x2e0] sm:$0xff] }
  0xa5   : > { %v1263_v15 = vsel %vm1143_vm2, %v1011_v6, 0.0  ;;  %v1026_v6 = vld [vmem:[%s2672_s14 + $0x12c] sm:$0xf] }
  0xa6   : > { %v898_v23 = vadd.f32 %v897_v14, %v896_v17  ;;  %v919_v17 = vsel %vm757_vm1, %v742_v7, 0.0  ;;  %v1242_v22 = vadd.f32 %v1241_v12, %v1240_v16  ;;  %v1012_v12 = vld [vmem:[%s2672_s14 + $0xf4] sm:$0xf]  ;;  %v754_v16 = vld [vmem:[%s2632_s27 + $0x2e8] sm:$0xff] }
  0xa7   : > { %v1265_v21 = vsel %vm1143_vm2, %v1012_v12, 0.0  ;;  %v1028_v12 = vld [vmem:[%s2672_s14 + $0x134] sm:$0xf] }
  0xa8   : > { %v900_v29 = vadd.f32 %v899_v20, %v898_v23  ;;  %v921_v23 = vsel %vm757_vm1, %v743_v13, 0.0  ;;  %v1244_v28 = vadd.f32 %v1243_v18, %v1242_v22  ;;  %v1013_v18 = vld [vmem:[%s2672_s14 + $0xf8] sm:$0xf]  ;;  %v755_v22 = vld [vmem:[%s2632_s27 + $0x2f0] sm:$0xff] }
  0xa9   : > { %v1267_v27 = vsel %vm1143_vm2, %v1013_v18, 0.0  ;;  %v1030_v18 = vld [vmem:[%s2672_s14 + $0x13c] sm:$0xf] }
  0xaa   : > { %v902_v35 = vadd.f32 %v901_v26, %v900_v29  ;;  %v923_v29 = vsel %vm757_vm1, %v744_v19, 0.0  ;;  %v1246_v34 = vadd.f32 %v1245_v24, %v1244_v28  ;;  %v1014_v24 = vld [vmem:[%s2672_s14 + $0xfc] sm:$0xf] }
  0xab   : > { %v756_v28 = vld [vmem:[%s2632_s27 + $0x2f8] sm:$0xff]  ;;  %v1269_v33 = vsel %vm1143_vm2, %v1014_v24, 0.0  ;;  %v1032_v24 = vld [vmem:[%s2672_s14 + $0x144] sm:$0xf] }
  0xac   : > { %v904_v41 = vadd.f32 %v903_v32, %v902_v35  ;;  %v925_v35 = vsel %vm757_vm1, %v745_v25, 0.0  ;;  %v1248_v40 = vadd.f32 %v1247_v30, %v1246_v34  ;;  %v1015_v30 = vld [vmem:[%s2672_s14 + $0x100] sm:$0xf] }
  0xae   : > { %v906_v47 = vadd.f32 %v905_v38, %v904_v41  ;;  %v927_v41 = vsel %vm757_vm1, %v746_v31, 0.0  ;;  %v1250_v46 = vadd.f32 %v1249_v36, %v1248_v40  ;;  %v1017_v40 = vld [vmem:[%s2672_s14 + $0x108] sm:$0xf] }
  0xb0   : > { %v908_v53 = vadd.f32 %v907_v44, %v906_v47  ;;  %v929_v47 = vsel %vm757_vm1, %v747_v37, 0.0  ;;  %v1252_v52 = vadd.f32 %v1251_v42, %v1250_v46  ;;  %v947_v37 = vsel %vm757_vm1, %v756_v28, 0.0  ;;  %v1019_v46 = vld [vmem:[%s2672_s14 + $0x110] sm:$0xf] }
  0xb2   : > { %v910_v59 = vadd.f32 %v909_v50, %v908_v53  ;;  %v931_v53 = vsel %vm757_vm1, %v748_v43, 0.0  ;;  %v1254_v58 = vadd.f32 %v1253_v48, %v1252_v52  ;;  %v1020_v52 = vld [vmem:[%s2672_s14 + $0x114] sm:$0xf] }
  0xb3   : > { %v1281_v57 = vsel %vm1143_vm2, %v1020_v52, 0.0 }
  0xb4   : > { %v912_v2 = vadd.f32 %v911_v56, %v910_v59  ;;  %v933_v59 = vsel %vm757_vm1, %v749_v49, 0.0  ;;  %v1256_v0 = vadd.f32 %v1255_v54, %v1254_v58  ;;  %v1688_v49 = vld [vmem:[%s3588_s6] sm:$0xf]  ;;  %v1279_v54 = vsel %vm1143_vm2, %v1019_v46, 0.0  ;;  %v1022_v58 = vld [vmem:[%s2672_s14 + $0x11c] sm:$0xf] }
  0xb5   : > { %v1285_v63 = vsel %vm1143_vm2, %v1022_v58, 0.0 }
  0xb6   : > { %v914_v8 = vadd.f32 %v913_v62, %v912_v2  ;;  %v935_v2 = vsel %vm757_vm1, %v750_v55, 0.0  ;;  %v1258_v7 = vadd.f32 %v1257_v60, %v1256_v0  ;;  %v1021_v55 = vld [vmem:[%s2672_s14 + $0x118] sm:$0xf]  ;;  %v1024_v0 = vld [vmem:[%s2672_s14 + $0x124] sm:$0xf] }
  0xb7   : > { %v1283_v60 = vsel %vm1143_vm2, %v1021_v55, 0.0 }
  0xb8   : > { %v916_v14 = vadd.f32 %v915_v5, %v914_v8  ;;  %v937_v8 = vsel %vm757_vm1, %v751_v61, 0.0  ;;  %v1260_v13 = vadd.f32 %v1259_v3, %v1258_v7  ;;  %v1023_v61 = vld [vmem:[%s2672_s14 + $0x120] sm:$0xf]  ;;  %v1025_v3 = vld [vmem:[%s2672_s14 + $0x128] sm:$0xf] }
  0xba   : > { %v918_v20 = vadd.f32 %v917_v11, %v916_v14  ;;  %v939_v14 = vsel %vm757_vm1, %v752_v4, 0.0  ;;  %v1262_v19 = vadd.f32 %v1261_v9, %v1260_v13  ;;  %v1027_v9 = vld [vmem:[%s2672_s14 + $0x130] sm:$0xf] }
  0xbc   : > { %v920_v26 = vadd.f32 %v919_v17, %v918_v20  ;;  %v941_v20 = vsel %vm757_vm1, %v753_v10, 0.0  ;;  %v1264_v25 = vadd.f32 %v1263_v15, %v1262_v19  ;;  %v1029_v15 = vld [vmem:[%s2672_s14 + $0x138] sm:$0xf] }
  0xbe   : > { %v922_v32 = vadd.f32 %v921_v23, %v920_v26  ;;  %v943_v26 = vsel %vm757_vm1, %v754_v16, 0.0  ;;  %v1266_v31 = vadd.f32 %v1265_v21, %v1264_v25  ;;  %v1031_v21 = vld [vmem:[%s2672_s14 + $0x140] sm:$0xf] }
  0xc0   : > { %v924_v38 = vadd.f32 %v923_v29, %v922_v32  ;;  %v945_v32 = vsel %vm757_vm1, %v755_v22, 0.0  ;;  %v1268_v36 = vadd.f32 %v1267_v27, %v1266_v31  ;;  %v1033_v27 = vld [vmem:[%s2672_s14 + $0x148] sm:$0xf] }
  0xc2   : > { %v926_v44 = vadd.f32 %v925_v35, %v924_v38  ;;  %v1016_v35 = vld [vmem:[%s2672_s14 + $0x104] sm:$0xf]  ;;  %v1271_v38 = vsel %vm1143_vm2, %v1015_v30, 0.0  ;;  %v1034_v30 = vld [vmem:[%s2672_s14 + $0x14c] sm:$0xf] }
  0xc3   : > { %v1273_v42 = vsel %vm1143_vm2, %v1016_v35, 0.0  ;;  %v1309_v35 = vsel %vm1143_vm2, %v1034_v30, 0.0 }
  0xc4   : > { %v928_v50 = vadd.f32 %v927_v41, %v926_v44  ;;  %v1270_v41 = vadd.f32 %v1269_v33, %v1268_v36  ;;  %v1018_v44 = vld [vmem:[%s2672_s14 + $0x10c] sm:$0xf]  ;;  %v1035_v33 = vld [vmem:[%s2672_s14 + $0x150] sm:$0xf]  ;;  %v1036_v36 = vld [vmem:[%s2672_s14 + $0x154] sm:$0xf] }
  0xc5   : > { %v1277_v51 = vsel %vm1143_vm2, %v1018_v44, 0.0 }
  0xc6   : > { %v930_v56 = vadd.f32 %v929_v47, %v928_v50  ;;  %v1272_v45 = vadd.f32 %v1271_v38, %v1270_v41  ;;  %v1275_v47 = vsel %vm1143_vm2, %v1017_v40, 0.0  ;;  %v1311_v38 = vsel %vm1143_vm2, %v1035_v33, 0.0 }
  0xc7   : > { %v1313_v41 = vsel %vm1143_vm2, %v1036_v36, 0.0 }
  0xc8   : > { %v932_v62 = vadd.f32 %v931_v53, %v930_v56  ;;  %v1274_v50 = vadd.f32 %v1273_v42, %v1272_v45  ;;  %v1038_v42 = vld [vmem:[%s2672_s14 + $0x15c] sm:$0xf]  ;;  %v1039_v45 = vld [vmem:[%s2672_s14 + $0x160] sm:$0xf] }
  0xca   : > { %v934_v5 = vadd.f32 %v933_v59, %v932_v62  ;;  %v1276_v53 = vadd.f32 %v1275_v47, %v1274_v50  ;;  %v1317_v47 = vsel %vm1143_vm2, %v1038_v42, 0.0  ;;  %v1319_v50 = vsel %vm1143_vm2, %v1039_v45, 0.0 }
  0xcc   : > { %v936_v11 = vadd.f32 %v935_v2, %v934_v5  ;;  %v1278_v56 = vadd.f32 %v1277_v51, %v1276_v53  ;;  %v1287_v2 = vsel %vm1143_vm2, %v1023_v61, 0.0  ;;  %v1289_v5 = vsel %vm1143_vm2, %v1024_v0, 0.0  ;;  %v1041_v51 = vld [vmem:[%s2672_s14 + $0x168] sm:$0xf] }
  0xce   : > { %v938_v17 = vadd.f32 %v937_v8, %v936_v11  ;;  %v1280_v59 = vadd.f32 %v1279_v54, %v1278_v56  ;;  %v1291_v8 = vsel %vm1143_vm2, %v1025_v3, 0.0  ;;  %v1293_v11 = vsel %vm1143_vm2, %v1026_v6, 0.0  ;;  %v1042_v54 = vld [vmem:[%s2672_s14 + $0x16c] sm:$0xf] }
  0xcf   : > { %v1323_v56 = vsel %vm1143_vm2, %v1041_v51, 0.0 }
  0xd0   : > { %v940_v23 = vadd.f32 %v939_v14, %v938_v17  ;;  %v1282_v62 = vadd.f32 %v1281_v57, %v1280_v59  ;;  %v1295_v14 = vsel %vm1143_vm2, %v1027_v9, 0.0  ;;  %v1297_v17 = vsel %vm1143_vm2, %v1028_v12, 0.0  ;;  %v1043_v57 = vld [vmem:[%s2672_s14 + $0x170] sm:$0xf] }
  0xd1   : > { %v1325_v59 = vsel %vm1143_vm2, %v1042_v54, 0.0 }
  0xd2   : > { %v942_v29 = vadd.f32 %v941_v20, %v940_v23  ;;  %v1299_v20 = vsel %vm1143_vm2, %v1029_v15, 0.0  ;;  %v1301_v23 = vsel %vm1143_vm2, %v1030_v18, 0.0 }
  0xd4   : > { %v944_v34 = vadd.f32 %v943_v26, %v942_v29  ;;  %v1303_v26 = vsel %vm1143_vm2, %v1031_v21, 0.0  ;;  %v1305_v29 = vsel %vm1143_vm2, %v1032_v24, 0.0 }
  0xd6   : > { %v946_v39 = vadd.f32 %v945_v32, %v944_v34  ;;  %v1307_v32 = vsel %vm1143_vm2, %v1033_v27, 0.0 }
  0xd8   : > { %v948_v43 = vadd.f32 %v947_v37, %v946_v39  ;;  %v1037_v39 = vld [vmem:[%s2672_s14 + $0x158] sm:$0xf] }
  0xd9   : > { %v1315_v44 = vsel %vm1143_vm2, %v1037_v39, 0.0 }
  0xda   : > { %v950_v48 = vmul.f32 0.010416667, %v948_v43 }
  0xdc   : > { %2340 = vmatmul.mubr.msk.f32.vlgmr.msra.gmra.mrb[0].mxu0 %vm757_vm1, %v950_v48  ;;  %v1040_v48 = vld [vmem:[%s2672_s14 + $0x164] sm:$0xf] }
  0xdd   : > { %2348 = vmatpush3.msk.msra.mxu0 %vm1693_vm3, %v1688_v49  ;;  %2349 = vmatprep.mubr.msk.f32.mxu0 %vm2515_vm0, %v2514_v1  ;;  %v1284_v1 = vadd.f32 %v1283_v60, %v1282_v62  ;;  %v1321_v53 = vsel %vm1143_vm2, %v1040_v48, 0.0  ;;  %v1044_v60 = vld [vmem:[%s2672_s14 + $0x174] sm:$0xf]  ;;  %v1327_v62 = vsel %vm1143_vm2, %v1043_v57, 0.0 }
  0xdf   : > { %v1286_v4 = vadd.f32 %v1285_v63, %v1284_v1  ;;  %v1045_v63 = vld [vmem:[%s2672_s14 + $0x178] sm:$0xf]  ;;  %v1329_v1 = vsel %vm1143_vm2, %v1044_v60, 0.0 }
  0xe1   : > { %v1288_v7 = vadd.f32 %v1287_v2, %v1286_v4  ;;  %v1046_v2 = vld [vmem:[%s2672_s14 + $0x17c] sm:$0xf]  ;;  %v1331_v4 = vsel %vm1143_vm2, %v1045_v63, 0.0 }
  0xe3   : > { %v1290_v10 = vadd.f32 %v1289_v5, %v1288_v7  ;;  %v1047_v5 = vld [vmem:[%s2672_s14 + $0x180] sm:$0xf]  ;;  %v1333_v7 = vsel %vm1143_vm2, %v1046_v2, 0.0 }
  0xe5   : > { %v1292_v13 = vadd.f32 %v1291_v8, %v1290_v10  ;;  %v1048_v8 = vld [vmem:[%s2672_s14 + $0x184] sm:$0xf]  ;;  %v1335_v10 = vsel %vm1143_vm2, %v1047_v5, 0.0 }
  0xe7   : > { %v1294_v16 = vadd.f32 %v1293_v11, %v1292_v13  ;;  %v1049_v11 = vld [vmem:[%s2672_s14 + $0x188] sm:$0xf]  ;;  %v1337_v13 = vsel %vm1143_vm2, %v1048_v8, 0.0 }
  0xe9   : > { %v1296_v19 = vadd.f32 %v1295_v14, %v1294_v16  ;;  %v1050_v14 = vld [vmem:[%s2672_s14 + $0x18c] sm:$0xf]  ;;  %v1339_v16 = vsel %vm1143_vm2, %v1049_v11, 0.0 }
  0xeb   : > { %v1298_v22 = vadd.f32 %v1297_v17, %v1296_v19  ;;  %v1051_v17 = vld [vmem:[%s2672_s14 + $0x190] sm:$0xf]  ;;  %v1341_v19 = vsel %vm1143_vm2, %v1050_v14, 0.0 }
  0xed   : > { %v1300_v25 = vadd.f32 %v1299_v20, %v1298_v22  ;;  %v1052_v20 = vld [vmem:[%s2672_s14 + $0x194] sm:$0xf]  ;;  %v1343_v22 = vsel %vm1143_vm2, %v1051_v17, 0.0 }
  0xef   : > { %v1302_v28 = vadd.f32 %v1301_v23, %v1300_v25  ;;  %v1053_v23 = vld [vmem:[%s2672_s14 + $0x198] sm:$0xf]  ;;  %v1345_v25 = vsel %vm1143_vm2, %v1052_v20, 0.0 }
  0xf1   : > { %v1304_v31 = vadd.f32 %v1303_v26, %v1302_v28  ;;  %v1054_v26 = vld [vmem:[%s2672_s14 + $0x19c] sm:$0xf]  ;;  %v1347_v28 = vsel %vm1143_vm2, %v1053_v23, 0.0 }
  0xf3   : > { %v1306_v34 = vadd.f32 %v1305_v29, %v1304_v31  ;;  %v1055_v29 = vld [vmem:[%s2672_s14 + $0x1a0] sm:$0xf]  ;;  %v1349_v31 = vsel %vm1143_vm2, %v1054_v26, 0.0 }
  0xf5   : > { %v1308_v37 = vadd.f32 %v1307_v32, %v1306_v34  ;;  %v1056_v32 = vld [vmem:[%s2672_s14 + $0x1a4] sm:$0xf]  ;;  %v1351_v34 = vsel %vm1143_vm2, %v1055_v29, 0.0 }
  0xf7   : > { %v1310_v40 = vadd.f32 %v1309_v35, %v1308_v37  ;;  %v1057_v35 = vld [vmem:[%s2672_s14 + $0x1a8] sm:$0xf]  ;;  %v1353_v37 = vsel %vm1143_vm2, %v1056_v32, 0.0 }
  0xf9   : > { %v1312_v43 = vadd.f32 %v1311_v38, %v1310_v40  ;;  %v1058_v38 = vld [vmem:[%s2672_s14 + $0x1ac] sm:$0xf]  ;;  %v1355_v40 = vsel %vm1143_vm2, %v1057_v35, 0.0 }
  0xfb   : > { %v1314_v46 = vadd.f32 %v1313_v41, %v1312_v43  ;;  %v1059_v41 = vld [vmem:[%s2672_s14 + $0x1b0] sm:$0xf]  ;;  %v1357_v43 = vsel %vm1143_vm2, %v1058_v38, 0.0 }
  0xfd   : > { %v1316_v49 = vadd.f32 %v1315_v44, %v1314_v46  ;;  %v1060_v44 = vld [vmem:[%s2672_s14 + $0x1b4] sm:$0xf]  ;;  %v1359_v46 = vsel %vm1143_vm2, %v1059_v41, 0.0 }
  0xff   : > { %v1318_v52 = vadd.f32 %v1317_v47, %v1316_v49  ;;  %v1061_v47 = vld [vmem:[%s2672_s14 + $0x1b8] sm:$0xf]  ;;  %v1361_v49 = vsel %vm1143_vm2, %v1060_v44, 0.0 }
 0x101   : > { %v1320_v55 = vadd.f32 %v1319_v50, %v1318_v52  ;;  %v1062_v50 = vld [vmem:[%s2672_s14 + $0x1bc] sm:$0xf]  ;;  %v1363_v52 = vsel %vm1143_vm2, %v1061_v47, 0.0 }
 0x103   : > { %v1322_v58 = vadd.f32 %v1321_v53, %v1320_v55  ;;  %v1063_v53 = vld [vmem:[%s2672_s14 + $0x1c0] sm:$0xf]  ;;  %v1365_v55 = vsel %vm1143_vm2, %v1062_v50, 0.0 }
 0x105   : > { %v1324_v61 = vadd.f32 %v1323_v56, %v1322_v58  ;;  %v1064_v56 = vld [vmem:[%s2672_s14 + $0x1c4] sm:$0xf]  ;;  %v1367_v58 = vsel %vm1143_vm2, %v1063_v53, 0.0  ;;  %v1084_v53 = vld [vmem:[%s2672_s14 + $0x214] sm:$0xf] }
 0x107   : > { %v1326_v0 = vadd.f32 %v1325_v59, %v1324_v61  ;;  %v1065_v59 = vld [vmem:[%s2672_s14 + $0x1c8] sm:$0xf]  ;;  %v1369_v61 = vsel %vm1143_vm2, %v1064_v56, 0.0  ;;  %v1085_v56 = vld [vmem:[%s2672_s14 + $0x218] sm:$0xf] }
 0x109   : > { %v1328_v3 = vadd.f32 %v1327_v62, %v1326_v0  ;;  %v1066_v62 = vld [vmem:[%s2672_s14 + $0x1cc] sm:$0xf]  ;;  %v1371_v0 = vsel %vm1143_vm2, %v1065_v59, 0.0  ;;  %v1086_v59 = vld [vmem:[%s2672_s14 + $0x21c] sm:$0xf] }
 0x10b   : > { %v1330_v6 = vadd.f32 %v1329_v1, %v1328_v3  ;;  %v1067_v1 = vld [vmem:[%s2672_s14 + $0x1d0] sm:$0xf]  ;;  %v1373_v3 = vsel %vm1143_vm2, %v1066_v62, 0.0  ;;  %v1087_v62 = vld [vmem:[%s2672_s14 + $0x220] sm:$0xf] }
 0x10d   : > { %v1332_v9 = vadd.f32 %v1331_v4, %v1330_v6  ;;  %v1068_v4 = vld [vmem:[%s2672_s14 + $0x1d4] sm:$0xf]  ;;  %v1375_v6 = vsel %vm1143_vm2, %v1067_v1, 0.0  ;;  %v1088_v1 = vld [vmem:[%s2672_s14 + $0x224] sm:$0xf] }
 0x10f   : > { %v1334_v12 = vadd.f32 %v1333_v7, %v1332_v9  ;;  %v1069_v7 = vld [vmem:[%s2672_s14 + $0x1d8] sm:$0xf]  ;;  %v1377_v9 = vsel %vm1143_vm2, %v1068_v4, 0.0  ;;  %v1089_v4 = vld [vmem:[%s2672_s14 + $0x228] sm:$0xf] }
 0x111   : > { %v1336_v15 = vadd.f32 %v1335_v10, %v1334_v12  ;;  %v1070_v10 = vld [vmem:[%s2672_s14 + $0x1dc] sm:$0xf]  ;;  %v1379_v12 = vsel %vm1143_vm2, %v1069_v7, 0.0  ;;  %v1090_v7 = vld [vmem:[%s2672_s14 + $0x22c] sm:$0xf] }
 0x113   : > { %v1338_v18 = vadd.f32 %v1337_v13, %v1336_v15  ;;  %v1071_v13 = vld [vmem:[%s2672_s14 + $0x1e0] sm:$0xf]  ;;  %v1381_v15 = vsel %vm1143_vm2, %v1070_v10, 0.0  ;;  %v1091_v10 = vld [vmem:[%s2672_s14 + $0x230] sm:$0xf] }
 0x115   : > { %v1340_v21 = vadd.f32 %v1339_v16, %v1338_v18  ;;  %v1072_v16 = vld [vmem:[%s2672_s14 + $0x1e4] sm:$0xf]  ;;  %v1383_v18 = vsel %vm1143_vm2, %v1071_v13, 0.0  ;;  %v1092_v13 = vld [vmem:[%s2672_s14 + $0x234] sm:$0xf] }
 0x117   : > { %v1342_v24 = vadd.f32 %v1341_v19, %v1340_v21  ;;  %v1073_v19 = vld [vmem:[%s2672_s14 + $0x1e8] sm:$0xf]  ;;  %v1385_v21 = vsel %vm1143_vm2, %v1072_v16, 0.0  ;;  %v1093_v16 = vld [vmem:[%s2672_s14 + $0x238] sm:$0xf] }
 0x119   : > { %v1344_v27 = vadd.f32 %v1343_v22, %v1342_v24  ;;  %v1074_v22 = vld [vmem:[%s2672_s14 + $0x1ec] sm:$0xf]  ;;  %v1387_v24 = vsel %vm1143_vm2, %v1073_v19, 0.0  ;;  %v1094_v19 = vld [vmem:[%s2672_s14 + $0x23c] sm:$0xf] }
 0x11b   : > { %v1346_v30 = vadd.f32 %v1345_v25, %v1344_v27  ;;  %v1075_v25 = vld [vmem:[%s2672_s14 + $0x1f0] sm:$0xf]  ;;  %v1389_v27 = vsel %vm1143_vm2, %v1074_v22, 0.0  ;;  %v1095_v22 = vld [vmem:[%s2672_s14 + $0x240] sm:$0xf] }
 0x11d   : > { %v1348_v33 = vadd.f32 %v1347_v28, %v1346_v30  ;;  %v1076_v28 = vld [vmem:[%s2672_s14 + $0x1f4] sm:$0xf]  ;;  %v1391_v30 = vsel %vm1143_vm2, %v1075_v25, 0.0  ;;  %v1096_v25 = vld [vmem:[%s2672_s14 + $0x244] sm:$0xf] }
 0x11f   : > { %v1350_v36 = vadd.f32 %v1349_v31, %v1348_v33  ;;  %v1077_v31 = vld [vmem:[%s2672_s14 + $0x1f8] sm:$0xf]  ;;  %v1393_v33 = vsel %vm1143_vm2, %v1076_v28, 0.0  ;;  %v1097_v28 = vld [vmem:[%s2672_s14 + $0x248] sm:$0xf] }
 0x121   : > { %v1352_v39 = vadd.f32 %v1351_v34, %v1350_v36  ;;  %v1078_v34 = vld [vmem:[%s2672_s14 + $0x1fc] sm:$0xf]  ;;  %v1395_v36 = vsel %vm1143_vm2, %v1077_v31, 0.0  ;;  %v1098_v31 = vld [vmem:[%s2672_s14 + $0x24c] sm:$0xf] }
 0x123   : > { %v1354_v42 = vadd.f32 %v1353_v37, %v1352_v39  ;;  %v1079_v37 = vld [vmem:[%s2672_s14 + $0x200] sm:$0xf]  ;;  %v1397_v39 = vsel %vm1143_vm2, %v1078_v34, 0.0  ;;  %v1099_v34 = vld [vmem:[%s2672_s14 + $0x250] sm:$0xf] }
 0x125   : > { %v1356_v45 = vadd.f32 %v1355_v40, %v1354_v42  ;;  %v1080_v40 = vld [vmem:[%s2672_s14 + $0x204] sm:$0xf]  ;;  %v1399_v42 = vsel %vm1143_vm2, %v1079_v37, 0.0  ;;  %v1100_v37 = vld [vmem:[%s2672_s14 + $0x254] sm:$0xf] }
 0x127   : > { %v1358_v48 = vadd.f32 %v1357_v43, %v1356_v45  ;;  %v1081_v43 = vld [vmem:[%s2672_s14 + $0x208] sm:$0xf]  ;;  %v1401_v45 = vsel %vm1143_vm2, %v1080_v40, 0.0  ;;  %v1101_v40 = vld [vmem:[%s2672_s14 + $0x258] sm:$0xf] }
 0x129   : > { %v1360_v51 = vadd.f32 %v1359_v46, %v1358_v48  ;;  %v1082_v46 = vld [vmem:[%s2672_s14 + $0x20c] sm:$0xf]  ;;  %v1403_v48 = vsel %vm1143_vm2, %v1081_v43, 0.0  ;;  %v1102_v43 = vld [vmem:[%s2672_s14 + $0x25c] sm:$0xf] }
 0x12b   : > { %v1362_v54 = vadd.f32 %v1361_v49, %v1360_v51  ;;  %v1083_v49 = vld [vmem:[%s2672_s14 + $0x210] sm:$0xf]  ;;  %v1529_v51 = vld [vmem:[%s3585_s3] sm:$0xff] }
 0x12c   : > { %2344 = vmatprep.mubr.msk.f32.mxu1 %vm757_vm1, %v1529_v51 }
 0x12d   : > { %v1364_v57 = vadd.f32 %v1363_v52, %v1362_v54  ;;  %v1405_v52 = vsel %vm1143_vm2, %v1082_v46, 0.0  ;;  %v1103_v46 = vld [vmem:[%s2672_s14 + $0x260] sm:$0xf] }
 0x12e   : > { %v1447_v51 = vsel %vm1143_vm2, %v1103_v46, 0.0 }
 0x12f   : > { %v1366_v60 = vadd.f32 %v1365_v55, %v1364_v57  ;;  %v1407_v55 = vsel %vm1143_vm2, %v1083_v49, 0.0  ;;  %v1104_v49 = vld [vmem:[%s2672_s14 + $0x264] sm:$0xf] }
 0x131   : > { %v1368_v63 = vadd.f32 %v1367_v58, %v1366_v60  ;;  %v1409_v58 = vsel %vm1143_vm2, %v1084_v53, 0.0 }
 0x133   : > { %v1370_v2 = vadd.f32 %v1369_v61, %v1368_v63  ;;  %v1411_v61 = vsel %vm1143_vm2, %v1085_v56, 0.0 }
 0x135   : > { %v1372_v5 = vadd.f32 %v1371_v0, %v1370_v2  ;;  %v1413_v0 = vsel %vm1143_vm2, %v1086_v59, 0.0 }
 0x137   : > { %v1374_v8 = vadd.f32 %v1373_v3, %v1372_v5  ;;  %v1415_v3 = vsel %vm1143_vm2, %v1087_v62, 0.0 }
 0x139   : > { %v1376_v11 = vadd.f32 %v1375_v6, %v1374_v8  ;;  %v1417_v6 = vsel %vm1143_vm2, %v1088_v1, 0.0 }
 0x13b   : > { %v1378_v14 = vadd.f32 %v1377_v9, %v1376_v11  ;;  %v1419_v9 = vsel %vm1143_vm2, %v1089_v4, 0.0 }
 0x13d   : > { %v1380_v17 = vadd.f32 %v1379_v12, %v1378_v14  ;;  %v1421_v12 = vsel %vm1143_vm2, %v1090_v7, 0.0 }
 0x13f   : > { %v1382_v20 = vadd.f32 %v1381_v15, %v1380_v17  ;;  %v1423_v15 = vsel %vm1143_vm2, %v1091_v10, 0.0 }
 0x141   : > { %v1384_v23 = vadd.f32 %v1383_v18, %v1382_v20  ;;  %v1425_v18 = vsel %vm1143_vm2, %v1092_v13, 0.0 }
 0x143   : > { %v1386_v26 = vadd.f32 %v1385_v21, %v1384_v23  ;;  %v1427_v21 = vsel %vm1143_vm2, %v1093_v16, 0.0 }
 0x145   : > { %v1388_v29 = vadd.f32 %v1387_v24, %v1386_v26  ;;  %v1429_v24 = vsel %vm1143_vm2, %v1094_v19, 0.0 }
 0x147   : > { %v1390_v32 = vadd.f32 %v1389_v27, %v1388_v29  ;;  %v1431_v27 = vsel %vm1143_vm2, %v1095_v22, 0.0 }
 0x149   : > { %v1392_v35 = vadd.f32 %v1391_v30, %v1390_v32  ;;  %v1433_v30 = vsel %vm1143_vm2, %v1096_v25, 0.0 }
 0x14b   : > { %v1394_v38 = vadd.f32 %v1393_v33, %v1392_v35  ;;  %v1435_v33 = vsel %vm1143_vm2, %v1097_v28, 0.0 }
 0x14d   : > { %v1396_v41 = vadd.f32 %v1395_v36, %v1394_v38  ;;  %v1437_v36 = vsel %vm1143_vm2, %v1098_v31, 0.0 }
 0x14f   : > { %v1398_v44 = vadd.f32 %v1397_v39, %v1396_v41  ;;  %v1439_v39 = vsel %vm1143_vm2, %v1099_v34, 0.0 }
 0x151   : > { %v1400_v47 = vadd.f32 %v1399_v42, %v1398_v44  ;;  %v1441_v42 = vsel %vm1143_vm2, %v1100_v37, 0.0 }
 0x153   : > { %v1402_v50 = vadd.f32 %v1401_v45, %v1400_v47  ;;  %v1443_v45 = vsel %vm1143_vm2, %v1101_v40, 0.0 }
 0x155   : > { %v1404_v54 = vadd.f32 %v1403_v48, %v1402_v50  ;;  %v1445_v48 = vsel %vm1143_vm2, %v1102_v43, 0.0 }
 0x157   : > { %v1406_v57 = vadd.f32 %v1405_v52, %v1404_v54  ;;  %v1105_v52 = vld [vmem:[%s2672_s14 + $0x268] sm:$0xf]  ;;  %v1449_v54 = vsel %vm1143_vm2, %v1104_v49, 0.0 }
 0x159   : > { %v1408_v60 = vadd.f32 %v1407_v55, %v1406_v57  ;;  %v1106_v55 = vld [vmem:[%s2672_s14 + $0x26c] sm:$0xf]  ;;  %v1451_v57 = vsel %vm1143_vm2, %v1105_v52, 0.0 }
 0x15a   : > { %v1530_v52 = vld [vmem:[%s3585_s3 + $0x8] sm:$0xff] }
 0x15b   : > { %v1410_v63 = vadd.f32 %v1409_v58, %v1408_v60  ;;  %v1107_v58 = vld [vmem:[%s2672_s14 + $0x270] sm:$0xf]  ;;  %v1453_v60 = vsel %vm1143_vm2, %v1106_v55, 0.0 }
 0x15d   : > { %v1412_v2 = vadd.f32 %v1411_v61, %v1410_v63  ;;  %v1108_v61 = vld [vmem:[%s2672_s14 + $0x274] sm:$0xf]  ;;  %v1455_v63 = vsel %vm1143_vm2, %v1107_v58, 0.0 }
 0x15f   : > { %v1414_v5 = vadd.f32 %v1413_v0, %v1412_v2  ;;  %v1109_v0 = vld [vmem:[%s2672_s14 + $0x278] sm:$0xf]  ;;  %v1457_v2 = vsel %vm1143_vm2, %v1108_v61, 0.0 }
 0x161   : > { %v1416_v8 = vadd.f32 %v1415_v3, %v1414_v5  ;;  %v1110_v3 = vld [vmem:[%s2672_s14 + $0x27c] sm:$0xf]  ;;  %v1459_v5 = vsel %vm1143_vm2, %v1109_v0, 0.0 }
 0x163   : > { %v1418_v11 = vadd.f32 %v1417_v6, %v1416_v8  ;;  %v1111_v6 = vld [vmem:[%s2672_s14 + $0x280] sm:$0xf]  ;;  %v1461_v8 = vsel %vm1143_vm2, %v1110_v3, 0.0 }
 0x165   : > { %v1420_v14 = vadd.f32 %v1419_v9, %v1418_v11  ;;  %v1112_v9 = vld [vmem:[%s2672_s14 + $0x284] sm:$0xf]  ;;  %v1463_v11 = vsel %vm1143_vm2, %v1111_v6, 0.0 }
 0x167   : > { %v1422_v17 = vadd.f32 %v1421_v12, %v1420_v14  ;;  %v1113_v12 = vld [vmem:[%s2672_s14 + $0x288] sm:$0xf]  ;;  %v1465_v14 = vsel %vm1143_vm2, %v1112_v9, 0.0 }
 0x169   : > { %v1424_v20 = vadd.f32 %v1423_v15, %v1422_v17  ;;  %v1114_v15 = vld [vmem:[%s2672_s14 + $0x28c] sm:$0xf]  ;;  %v1467_v17 = vsel %vm1143_vm2, %v1113_v12, 0.0 }
 0x16b   : > { %v1426_v23 = vadd.f32 %v1425_v18, %v1424_v20  ;;  %v1115_v18 = vld [vmem:[%s2672_s14 + $0x290] sm:$0xf]  ;;  %v1469_v20 = vsel %vm1143_vm2, %v1114_v15, 0.0 }
 0x16d   : > { %v1428_v26 = vadd.f32 %v1427_v21, %v1426_v23  ;;  %v1116_v21 = vld [vmem:[%s2672_s14 + $0x294] sm:$0xf]  ;;  %v1471_v23 = vsel %vm1143_vm2, %v1115_v18, 0.0 }
 0x16f   : > { %v1430_v29 = vadd.f32 %v1429_v24, %v1428_v26  ;;  %v1117_v24 = vld [vmem:[%s2672_s14 + $0x298] sm:$0xf]  ;;  %v1473_v26 = vsel %vm1143_vm2, %v1116_v21, 0.0 }
 0x171   : > { %v1432_v32 = vadd.f32 %v1431_v27, %v1430_v29  ;;  %v1118_v27 = vld [vmem:[%s2672_s14 + $0x29c] sm:$0xf]  ;;  %v1475_v29 = vsel %vm1143_vm2, %v1117_v24, 0.0 }
 0x173   : > { %v1434_v35 = vadd.f32 %v1433_v30, %v1432_v32  ;;  %v1119_v30 = vld [vmem:[%s2672_s14 + $0x2a0] sm:$0xf]  ;;  %v1477_v32 = vsel %vm1143_vm2, %v1118_v27, 0.0 }
 0x175   : > { %v1436_v38 = vadd.f32 %v1435_v33, %v1434_v35  ;;  %v1120_v33 = vld [vmem:[%s2672_s14 + $0x2a4] sm:$0xf]  ;;  %v1479_v35 = vsel %vm1143_vm2, %v1119_v30, 0.0 }
 0x177   : > { %v1438_v41 = vadd.f32 %v1437_v36, %v1436_v38  ;;  %v1121_v36 = vld [vmem:[%s2672_s14 + $0x2a8] sm:$0xf]  ;;  %v1481_v38 = vsel %vm1143_vm2, %v1120_v33, 0.0 }
 0x179   : > { %v1440_v44 = vadd.f32 %v1439_v39, %v1438_v41  ;;  %v1122_v39 = vld [vmem:[%s2672_s14 + $0x2ac] sm:$0xf]  ;;  %v1483_v41 = vsel %vm1143_vm2, %v1121_v36, 0.0 }
 0x17b   : > { %v1442_v47 = vadd.f32 %v1441_v42, %v1440_v44  ;;  %v1123_v42 = vld [vmem:[%s2672_s14 + $0x2b0] sm:$0xf]  ;;  %v1485_v44 = vsel %vm1143_vm2, %v1122_v39, 0.0 }
 0x17d   : > { %v1444_v50 = vadd.f32 %v1443_v45, %v1442_v47  ;;  %v1124_v45 = vld [vmem:[%s2672_s14 + $0x2b4] sm:$0xf]  ;;  %v1487_v47 = vsel %vm1143_vm2, %v1123_v42, 0.0 }
 0x17f   : > { %v1446_v53 = vadd.f32 %v1445_v48, %v1444_v50  ;;  %v1125_v48 = vld [vmem:[%s2672_s14 + $0x2b8] sm:$0xf]  ;;  %v1489_v50 = vsel %vm1143_vm2, %v1124_v45, 0.0 }
 0x181   : > { %v1448_v56 = vadd.f32 %v1447_v51, %v1446_v53  ;;  %v1126_v53 = vld [vmem:[%s2672_s14 + $0x2bc] sm:$0xf] }
 0x183   : > { %v1450_v59 = vadd.f32 %v1449_v54, %v1448_v56  ;;  %v1491_v56 = vsel %vm1143_vm2, %v1125_v48, 0.0  ;;  %v1687_v48 = vld [vmem:[%s3587_s5 + $0x8] sm:$0xff] }
 0x185   : > { %v1452_v62 = vadd.f32 %v1451_v57, %v1450_v59  ;;  %v1127_v57 = vld [vmem:[%s2672_s14 + $0x2c0] sm:$0xf]  ;;  %v1493_v59 = vsel %vm1143_vm2, %v1126_v53, 0.0  ;;  %v373_v53 = vld [vmem:[%s3243_s17 + $0x10] sm:$0xff] }
 0x187   : > { %v1454_v1 = vadd.f32 %v1453_v60, %v1452_v62  ;;  %v1128_v60 = vld [vmem:[%s2672_s14 + $0x2c4] sm:$0xf]  ;;  %v1495_v62 = vsel %vm1143_vm2, %v1127_v57, 0.0 }
 0x189   : > { %v1456_v4 = vadd.f32 %v1455_v63, %v1454_v1  ;;  %v1129_v63 = vld [vmem:[%s2672_s14 + $0x2c8] sm:$0xf]  ;;  %v1497_v1 = vsel %vm1143_vm2, %v1128_v60, 0.0 }
 0x18b   : > { %v1458_v7 = vadd.f32 %v1457_v2, %v1456_v4  ;;  %v1130_v2 = vld [vmem:[%s2672_s14 + $0x2cc] sm:$0xf]  ;;  %v1499_v4 = vsel %vm1143_vm2, %v1129_v63, 0.0  ;;  %v378_v63 = vld [vmem:[%s3243_s17 + $0x38] sm:$0xff] }
 0x18d   : > { %v1460_v10 = vadd.f32 %v1459_v5, %v1458_v7  ;;  %v1131_v5 = vld [vmem:[%s2672_s14 + $0x2d0] sm:$0xf]  ;;  %v1501_v7 = vsel %vm1143_vm2, %v1130_v2, 0.0 }
 0x18f   : > { %v1462_v13 = vadd.f32 %v1461_v8, %v1460_v10  ;;  %v1132_v8 = vld [vmem:[%s2672_s14 + $0x2d4] sm:$0xf]  ;;  %v1503_v10 = vsel %vm1143_vm2, %v1131_v5, 0.0  ;;  %v380_v5 = vld [vmem:[%s3243_s17 + $0x48] sm:$0xff] }
 0x191   : > { %v1464_v16 = vadd.f32 %v1463_v11, %v1462_v13  ;;  %v1133_v11 = vld [vmem:[%s2672_s14 + $0x2d8] sm:$0xf]  ;;  %v1505_v13 = vsel %vm1143_vm2, %v1132_v8, 0.0 }
 0x193   : > { %v1466_v19 = vadd.f32 %v1465_v14, %v1464_v16  ;;  %v1134_v14 = vld [vmem:[%s2672_s14 + $0x2dc] sm:$0xf]  ;;  %v1507_v16 = vsel %vm1143_vm2, %v1133_v11, 0.0 }
 0x194   : > { %v382_v11 = vld [vmem:[%s3243_s17 + $0x58] sm:$0xff] }
 0x195   : > { %v1468_v22 = vadd.f32 %v1467_v17, %v1466_v19  ;;  %v1135_v17 = vld [vmem:[%s2672_s14 + $0x2e0] sm:$0xf]  ;;  %v1509_v19 = vsel %vm1143_vm2, %v1134_v14, 0.0 }
 0x197   : > { %v1470_v25 = vadd.f32 %v1469_v20, %v1468_v22  ;;  %v1136_v20 = vld [vmem:[%s2672_s14 + $0x2e4] sm:$0xf]  ;;  %v1511_v22 = vsel %vm1143_vm2, %v1135_v17, 0.0  ;;  %v384_v17 = vld [vmem:[%s3243_s17 + $0x68] sm:$0xff] }
 0x199   : > { %v1472_v28 = vadd.f32 %v1471_v23, %v1470_v25  ;;  %v1137_v23 = vld [vmem:[%s2672_s14 + $0x2e8] sm:$0xf]  ;;  %v1513_v25 = vsel %vm1143_vm2, %v1136_v20, 0.0 }
 0x19b   : > { %v1474_v31 = vadd.f32 %v1473_v26, %v1472_v28  ;;  %v1138_v26 = vld [vmem:[%s2672_s14 + $0x2ec] sm:$0xf]  ;;  %v1515_v28 = vsel %vm1143_vm2, %v1137_v23, 0.0  ;;  %v386_v23 = vld [vmem:[%s3243_s17 + $0x78] sm:$0xff] }
 0x19d   : > { %v1476_v34 = vadd.f32 %v1475_v29, %v1474_v31  ;;  %v1139_v29 = vld [vmem:[%s2672_s14 + $0x2f0] sm:$0xf]  ;;  %v1517_v31 = vsel %vm1143_vm2, %v1138_v26, 0.0 }
 0x19f   : > { %v1478_v37 = vadd.f32 %v1477_v32, %v1476_v34  ;;  %v1140_v32 = vld [vmem:[%s2672_s14 + $0x2f4] sm:$0xf]  ;;  %v1519_v34 = vsel %vm1143_vm2, %v1139_v29, 0.0  ;;  %v388_v29 = vld [vmem:[%s3243_s17 + $0x88] sm:$0xff] }
 0x1a1   : > { %v1480_v40 = vadd.f32 %v1479_v35, %v1478_v37  ;;  %v1141_v35 = vld [vmem:[%s2672_s14 + $0x2f8] sm:$0xf]  ;;  %v1521_v37 = vsel %vm1143_vm2, %v1140_v32, 0.0 }
 0x1a3   : > { %v1482_v43 = vadd.f32 %v1481_v38, %v1480_v40  ;;  %v1142_v38 = vld [vmem:[%s2672_s14 + $0x2fc] sm:$0xf]  ;;  %v1523_v40 = vsel %vm1143_vm2, %v1141_v35, 0.0  ;;  %s2516_s14 = smov [#allocation2]  }
 0x1a4   : > { %v1525_v42 = vsel %vm1143_vm2, %v1142_v38, 0.0  ;;  %v390_v35 = vld [vmem:[%s3243_s17 + $0x98] sm:$0xff]  ;;  %s2454_s16 = sshll.u32 %s2516_s14, 4  ;;  %s2455_s16 = int_to_ptr.vmem [resolvable:$false] %s2454_s16 }
 0x1a5   : > { %v1484_v46 = vadd.f32 %v1483_v41, %v1482_v43  ;;  %p2457_p0 = scmp.lt.s32.totalorder %s3535_s25, %s2455_s16 }
 0x1a7   : > { %v1486_v49 = vadd.f32 %v1485_v44, %v1484_v46  ;;  %v1686_v46 = vld [vmem:[%s3587_s5] sm:$0xff] }
 0x1a9   : > { %v1488_v54 = vadd.f32 %v1487_v47, %v1486_v49 }
 0x1ab   : > { %v1490_v58 = vadd.f32 %v1489_v50, %v1488_v54  ;;  %v372_v50 = vld [vmem:[%s3243_s17 + $0x8] sm:$0xff] }
 0x1ac   : > { %v563_v54 = vsel %vm467_vm5, %v372_v50, 0.0 }
 0x1ad   : > { %v1492_v61 = vadd.f32 %v1491_v56, %v1490_v58  ;;  %v376_v56 = vld [vmem:[%s3243_s17 + $0x28] sm:$0xff]  ;;  %v469_v58 = vsel %vm467_vm5, %v373_v53, 0.0 }
 0x1ae   : > { %v396_v53 = vld [vmem:[%s3243_s17 + $0xc8] sm:$0xff] }
 0x1af   : > { %v1601_v51 = vpop.f32.mrb[0].mxu0  ;;  %v1494_v0 = vadd.f32 %v1493_v59, %v1492_v61  ;;  %v375_v59 = vld [vmem:[%s3243_s17 + $0x20] sm:$0xff]  ;;  %v566_v61 = vsel %vm467_vm5, %v376_v56, 0.0 }
 0x1b0   : > { %2342 = vmatprep.subr.mxu1 %v1601_v51  ;;  %v2341_v55 = vpop.f32.mrb[1].mxu0 }
 0x1b1   : > { %2343 = vmatpush3.msra.mxu1 %v1601_v51  ;;  %v1496_v3 = vadd.f32 %v1495_v62, %v1494_v0  ;;  %v374_v51 = vld [vmem:[%s3243_s17 + $0x18] sm:$0xff]  ;;  %v471_v0 = vsel %vm467_vm5, %v375_v59, 0.0 }
 0x1b2   : > { %2345 = vmatmul.mubr.msk.f32.vlgmr.msra.gmra.mrb[0].mxu1 %vm757_vm1, %v1530_v52  ;;  %v371_v52 = vld [vmem:[%s3243_s17] sm:$0xff]  ;;  %v564_v55 = vsel %vm467_vm5, %v374_v51, 0.0  ;;  %v398_v59 = vld [vmem:[%s3243_s17 + $0xd8] sm:$0xff] }
 0x1b3   : > { %v1498_v6 = vadd.f32 %v1497_v1, %v1496_v3  ;;  %2354 = vmatprep.mubr.msk.f32.mxu1 %vm1689_vm4, %v1686_v46  ;;  %v468_v57 = vsel %vm467_vm5, %v371_v52, 0.0  ;;  %v565_v60 = vadd.f32 %v564_v55, %v563_v54  ;;  %v377_v1 = vld [vmem:[%s3243_s17 + $0x30] sm:$0xff]  ;;  %v568_v3 = vsel %vm467_vm5, %v378_v63, 0.0  ;;  %v395_v55 = vld [vmem:[%s3243_s17 + $0xc0] sm:$0xff] }
 0x1b4   : > { %v470_v62 = vadd.f32 %v469_v58, %v468_v57  ;;  %v586_v57 = vsel %vm467_vm5, %v396_v53, 0.0  ;;  %v588_v63 = vsel %vm467_vm5, %v398_v59, 0.0 }
 0x1b5   : > { %v1500_v9 = vadd.f32 %v1499_v4, %v1498_v6  ;;  %v567_v2 = vadd.f32 %v566_v61, %v565_v60  ;;  %v473_v6 = vsel %vm467_vm5, %v377_v1, 0.0  ;;  %v491_v60 = vsel %vm467_vm5, %v395_v55, 0.0  ;;  %v397_v61 = vld [vmem:[%s3243_s17 + $0xd0] sm:$0xff]  ;;  %v400_v1 = vld [vmem:[%s3243_s17 + $0xe8] sm:$0xff] }
 0x1b6   : > { %v472_v4 = vadd.f32 %v471_v0, %v470_v62 }
 0x1b7   : > { %v1502_v12 = vadd.f32 %v1501_v7, %v1500_v9  ;;  %v379_v7 = vld [vmem:[%s3243_s17 + $0x40] sm:$0xff]  ;;  %v569_v8 = vadd.f32 %v568_v3, %v567_v2  ;;  %v570_v9 = vsel %vm467_vm5, %v380_v5, 0.0  ;;  %v493_v2 = vsel %vm467_vm5, %v397_v61, 0.0 }
 0x1b8   : > { %v399_v3 = vld [vmem:[%s3243_s17 + $0xe0] sm:$0xff]  ;;  %v590_v5 = vsel %vm467_vm5, %v400_v1, 0.0 }
 0x1b9   : > { %v1504_v15 = vadd.f32 %v1503_v10, %v1502_v12  ;;  %v474_v10 = vadd.f32 %v473_v6, %v472_v4  ;;  %v475_v12 = vsel %vm467_vm5, %v379_v7, 0.0  ;;  %v571_v14 = vadd.f32 %v570_v9, %v569_v8  ;;  %v402_v7 = vld [vmem:[%s3243_s17 + $0xf8] sm:$0xff]  ;;  %v401_v9 = vld [vmem:[%s3243_s17 + $0xf0] sm:$0xff] }
 0x1ba   : > { %v495_v8 = vsel %vm467_vm5, %v399_v3, 0.0 }
 0x1bb   : > { %v1506_v18 = vadd.f32 %v1505_v13, %v1504_v15  ;;  %v381_v13 = vld [vmem:[%s3243_s17 + $0x50] sm:$0xff]  ;;  %v572_v15 = vsel %vm467_vm5, %v382_v11, 0.0  ;;  %v592_v11 = vsel %vm467_vm5, %v402_v7, 0.0 }
 0x1bc   : > { %v573_v20 = vadd.f32 %v572_v15, %v571_v14  ;;  %v497_v14 = vsel %vm467_vm5, %v401_v9, 0.0  ;;  %v403_v15 = vld [vmem:[%s3243_s17 + $0x100] sm:$0xff] }
 0x1bd   : > { %v1508_v21 = vadd.f32 %v1507_v16, %v1506_v18  ;;  %v476_v16 = vadd.f32 %v475_v12, %v474_v10  ;;  %v477_v18 = vsel %vm467_vm5, %v381_v13, 0.0  ;;  %v404_v13 = vld [vmem:[%s3243_s17 + $0x108] sm:$0xff] }
 0x1bf   : > { %v1510_v24 = vadd.f32 %v1509_v19, %v1508_v21  ;;  %v383_v19 = vld [vmem:[%s3243_s17 + $0x60] sm:$0xff]  ;;  %v574_v21 = vsel %vm467_vm5, %v384_v17, 0.0  ;;  %v594_v17 = vsel %vm467_vm5, %v404_v13, 0.0 }
 0x1c0   : > { %v575_v26 = vadd.f32 %v574_v21, %v573_v20  ;;  %v499_v20 = vsel %vm467_vm5, %v403_v15, 0.0  ;;  %v405_v21 = vld [vmem:[%s3243_s17 + $0x110] sm:$0xff] }
 0x1c1   : > { %v1512_v27 = vadd.f32 %v1511_v22, %v1510_v24  ;;  %v478_v22 = vadd.f32 %v477_v18, %v476_v16  ;;  %v479_v24 = vsel %vm467_vm5, %v383_v19, 0.0  ;;  %v406_v19 = vld [vmem:[%s3243_s17 + $0x118] sm:$0xff] }
 0x1c3   : > { %v1514_v30 = vadd.f32 %v1513_v25, %v1512_v27  ;;  %v385_v25 = vld [vmem:[%s3243_s17 + $0x70] sm:$0xff]  ;;  %v576_v27 = vsel %vm467_vm5, %v386_v23, 0.0  ;;  %v596_v23 = vsel %vm467_vm5, %v406_v19, 0.0 }
 0x1c4   : > { %v577_v32 = vadd.f32 %v576_v27, %v575_v26  ;;  %v501_v26 = vsel %vm467_vm5, %v405_v21, 0.0  ;;  %v407_v27 = vld [vmem:[%s3243_s17 + $0x120] sm:$0xff] }
 0x1c5   : > { %v1516_v33 = vadd.f32 %v1515_v28, %v1514_v30  ;;  %v480_v28 = vadd.f32 %v479_v24, %v478_v22  ;;  %v481_v30 = vsel %vm467_vm5, %v385_v25, 0.0  ;;  %v408_v25 = vld [vmem:[%s3243_s17 + $0x128] sm:$0xff] }
 0x1c7   : > { %v1518_v36 = vadd.f32 %v1517_v31, %v1516_v33  ;;  %v387_v31 = vld [vmem:[%s3243_s17 + $0x80] sm:$0xff]  ;;  %v578_v33 = vsel %vm467_vm5, %v388_v29, 0.0  ;;  %v1858_v29 = vld [vmem:[%s3590_s8 + $0x8] sm:$0xff] }
 0x1c8   : > { %v579_v38 = vadd.f32 %v578_v33, %v577_v32  ;;  %v598_v32 = vsel %vm467_vm5, %v408_v25, 0.0 }
 0x1c9   : > { %v1520_v39 = vadd.f32 %v1519_v34, %v1518_v36  ;;  %v482_v34 = vadd.f32 %v481_v30, %v480_v28  ;;  %v483_v36 = vsel %vm467_vm5, %v387_v31, 0.0  ;;  %v1857_v28 = vld [vmem:[%s3590_s8] sm:$0xff] }
 0x1ca   : > { %v2392_v31 = vpack.c.bf16 %v1858_v29, %v1857_v28 }
 0x1cb   : > { %v1522_v41 = vadd.f32 %v1521_v37, %v1520_v39  ;;  %v389_v37 = vld [vmem:[%s3243_s17 + $0x90] sm:$0xff]  ;;  %v580_v39 = vsel %vm467_vm5, %v390_v35, 0.0  ;;  %v503_v35 = vsel %vm467_vm5, %v407_v27, 0.0 }
 0x1cc   : > { %2393 = vmatprep.subr.bf16.mxu0 %v2392_v31 }
 0x1cd   : > { %v1524_v43 = vadd.f32 %v1523_v40, %v1522_v41  ;;  %v484_v40 = vadd.f32 %v483_v36, %v482_v34  ;;  %v392_v41 = vld [vmem:[%s3243_s17 + $0xa8] sm:$0xff]  ;;  %v410_v34 = vld [vmem:[%s3243_s17 + $0x138] sm:$0xff]  ;;  %v409_v36 = vld [vmem:[%s3243_s17 + $0x130] sm:$0xff] }
 0x1cf   : > { %v1526_v44 = vadd.f32 %v1525_v42, %v1524_v43  ;;  %v485_v42 = vsel %vm467_vm5, %v389_v37, 0.0  ;;  %v391_v43 = vld [vmem:[%s3243_s17 + $0xa0] sm:$0xff] }
 0x1d0   : > { %v486_v46 = vadd.f32 %v485_v42, %v484_v40  ;;  %v412_v40 = vld [vmem:[%s3243_s17 + $0x148] sm:$0xff]  ;;  %v411_v42 = vld [vmem:[%s3243_s17 + $0x140] sm:$0xff] }
 0x1d1   : > { %v1528_v45 = vmul.f32 0.0052083335, %v1526_v44  ;;  %v581_v44 = vadd.f32 %v580_v39, %v579_v38  ;;  %v600_v38 = vsel %vm467_vm5, %v410_v34, 0.0 }
 0x1d3   : > { %2350 = vmatmul.mubr.msk.f32.vlgmr.msra.gmra.mrb[2].mxu0 %vm1689_vm4, %v1528_v45  ;;  %v582_v45 = vsel %vm467_vm5, %v392_v41, 0.0  ;;  %v505_v41 = vsel %vm467_vm5, %v409_v36, 0.0  ;;  %v432_v36 = vld [vmem:[%s3243_s17 + $0x1e8] sm:$0xff] }
 0x1d4   : > { %v583_v50 = vadd.f32 %v582_v45, %v581_v44  ;;  %2395 = vmatpush3.bf16.msra.mxu0 %v2392_v31  ;;  %v602_v44 = vsel %vm467_vm5, %v412_v40, 0.0  ;;  %v622_v40 = vsel %vm467_vm5, %v432_v36, 0.0 }
 0x2a6   : > { %v1763_v47 = vpop.f32.mrb[2].mxu0 }
 0x2a7   : > { %v2351_v49 = vpop.f32.mrb[3].mxu0  ;;  %2352 = vmatprep.subr.msk.mxu1 %vm1693_vm3, %v1763_v47 }
 0x2a8   : > { %2353 = vmatpush3.msk.msra.mxu1 %vm1693_vm3, %v1763_v47  ;;  %v394_v47 = vld [vmem:[%s3243_s17 + $0xb8] sm:$0xff]  ;;  %v393_v49 = vld [vmem:[%s3243_s17 + $0xb0] sm:$0xff] }
 0x2a9   : > { %2355 = vmatmul.mubr.msk.f32.vlgmr.msra.gmra.mrb[0].mxu1 %vm1689_vm4, %v1687_v48  ;;  %v487_v48 = vsel %vm467_vm5, %v391_v43, 0.0  ;;  %v584_v51 = vsel %vm467_vm5, %v394_v47, 0.0  ;;  %v489_v54 = vsel %vm467_vm5, %v393_v49, 0.0  ;;  %v507_v47 = vsel %vm467_vm5, %v411_v42, 0.0  ;;  %v434_v42 = vld [vmem:[%s3243_s17 + $0x1f8] sm:$0xff] }
 0x2aa   : > { %v488_v52 = vadd.f32 %v487_v48, %v486_v46  ;;  %v585_v56 = vadd.f32 %v584_v51, %v583_v50  ;;  %v414_v46 = vld [vmem:[%s3243_s17 + $0x158] sm:$0xff]  ;;  %v413_v48 = vld [vmem:[%s3243_s17 + $0x150] sm:$0xff] }
 0x2ab   : > { %v604_v50 = vsel %vm467_vm5, %v414_v46, 0.0  ;;  %v509_v53 = vsel %vm467_vm5, %v413_v48, 0.0  ;;  %v624_v46 = vsel %vm467_vm5, %v434_v42, 0.0  ;;  %v436_v48 = vld [vmem:[%s3243_s17 + $0x208] sm:$0xff] }
 0x2ac   : > { %v490_v58 = vadd.f32 %v489_v54, %v488_v52  ;;  %v587_v62 = vadd.f32 %v586_v57, %v585_v56  ;;  %v416_v52 = vld [vmem:[%s3243_s17 + $0x168] sm:$0xff]  ;;  %v415_v54 = vld [vmem:[%s3243_s17 + $0x160] sm:$0xff] }
 0x2ad   : > { %v606_v56 = vsel %vm467_vm5, %v416_v52, 0.0  ;;  %v511_v59 = vsel %vm467_vm5, %v415_v54, 0.0  ;;  %v626_v52 = vsel %vm467_vm5, %v436_v48, 0.0  ;;  %v438_v54 = vld [vmem:[%s3243_s17 + $0x218] sm:$0xff] }
 0x2ae   : > { %v492_v0 = vadd.f32 %v491_v60, %v490_v58  ;;  %v589_v4 = vadd.f32 %v588_v63, %v587_v62  ;;  %v418_v58 = vld [vmem:[%s3243_s17 + $0x178] sm:$0xff]  ;;  %v417_v60 = vld [vmem:[%s3243_s17 + $0x170] sm:$0xff] }
 0x2af   : > { %v608_v62 = vsel %vm467_vm5, %v418_v58, 0.0  ;;  %v513_v1 = vsel %vm467_vm5, %v417_v60, 0.0  ;;  %v628_v58 = vsel %vm467_vm5, %v438_v54, 0.0  ;;  %v440_v60 = vld [vmem:[%s3243_s17 + $0x228] sm:$0xff] }
 0x2b0   : > { %v494_v6 = vadd.f32 %v493_v2, %v492_v0  ;;  %v591_v10 = vadd.f32 %v590_v5, %v589_v4  ;;  %v420_v0 = vld [vmem:[%s3243_s17 + $0x188] sm:$0xff]  ;;  %v419_v2 = vld [vmem:[%s3243_s17 + $0x180] sm:$0xff] }
 0x2b1   : > { %v610_v4 = vsel %vm467_vm5, %v420_v0, 0.0  ;;  %v515_v7 = vsel %vm467_vm5, %v419_v2, 0.0  ;;  %v630_v0 = vsel %vm467_vm5, %v440_v60, 0.0  ;;  %v442_v2 = vld [vmem:[%s3243_s17 + $0x238] sm:$0xff] }
 0x2b2   : > { %v496_v12 = vadd.f32 %v495_v8, %v494_v6  ;;  %v593_v16 = vadd.f32 %v592_v11, %v591_v10  ;;  %v422_v6 = vld [vmem:[%s3243_s17 + $0x198] sm:$0xff]  ;;  %v421_v8 = vld [vmem:[%s3243_s17 + $0x190] sm:$0xff] }
 0x2b3   : > { %v612_v10 = vsel %vm467_vm5, %v422_v6, 0.0  ;;  %v517_v13 = vsel %vm467_vm5, %v421_v8, 0.0  ;;  %v632_v6 = vsel %vm467_vm5, %v442_v2, 0.0  ;;  %v444_v8 = vld [vmem:[%s3243_s17 + $0x248] sm:$0xff] }
 0x2b4   : > { %v498_v18 = vadd.f32 %v497_v14, %v496_v12  ;;  %v595_v22 = vadd.f32 %v594_v17, %v593_v16  ;;  %v424_v12 = vld [vmem:[%s3243_s17 + $0x1a8] sm:$0xff]  ;;  %v423_v14 = vld [vmem:[%s3243_s17 + $0x1a0] sm:$0xff] }
 0x2b5   : > { %v614_v16 = vsel %vm467_vm5, %v424_v12, 0.0  ;;  %v519_v19 = vsel %vm467_vm5, %v423_v14, 0.0  ;;  %v634_v12 = vsel %vm467_vm5, %v444_v8, 0.0  ;;  %v446_v14 = vld [vmem:[%s3243_s17 + $0x258] sm:$0xff] }
 0x2b6   : > { %v500_v24 = vadd.f32 %v499_v20, %v498_v18  ;;  %v597_v30 = vadd.f32 %v596_v23, %v595_v22  ;;  %v426_v18 = vld [vmem:[%s3243_s17 + $0x1b8] sm:$0xff]  ;;  %v425_v20 = vld [vmem:[%s3243_s17 + $0x1b0] sm:$0xff] }
 0x2b7   : > { %v616_v22 = vsel %vm467_vm5, %v426_v18, 0.0  ;;  %v521_v25 = vsel %vm467_vm5, %v425_v20, 0.0  ;;  %v636_v18 = vsel %vm467_vm5, %v446_v14, 0.0  ;;  %v448_v20 = vld [vmem:[%s3243_s17 + $0x268] sm:$0xff] }
 0x2b8   : > { %v502_v33 = vadd.f32 %v501_v26, %v500_v24  ;;  %v599_v37 = vadd.f32 %v598_v32, %v597_v30  ;;  %v428_v24 = vld [vmem:[%s3243_s17 + $0x1c8] sm:$0xff]  ;;  %v427_v26 = vld [vmem:[%s3243_s17 + $0x1c0] sm:$0xff]  ;;  %v430_v30 = vld [vmem:[%s3243_s17 + $0x1d8] sm:$0xff] }
 0x2b9   : > { %v618_v28 = vsel %vm467_vm5, %v428_v24, 0.0  ;;  %v523_v31 = vsel %vm467_vm5, %v427_v26, 0.0  ;;  %v429_v32 = vld [vmem:[%s3243_s17 + $0x1d0] sm:$0xff]  ;;  %v620_v34 = vsel %vm467_vm5, %v430_v30, 0.0  ;;  %v638_v24 = vsel %vm467_vm5, %v448_v20, 0.0  ;;  %v450_v26 = vld [vmem:[%s3243_s17 + $0x278] sm:$0xff] }
 0x2ba   : > { %v504_v39 = vadd.f32 %v503_v35, %v502_v33  ;;  %v601_v43 = vadd.f32 %v600_v38, %v599_v37  ;;  %v525_v37 = vsel %vm467_vm5, %v429_v32, 0.0  ;;  %v431_v38 = vld [vmem:[%s3243_s17 + $0x1e0] sm:$0xff]  ;;  %v640_v30 = vsel %vm467_vm5, %v450_v26, 0.0  ;;  %v452_v32 = vld [vmem:[%s3243_s17 + $0x288] sm:$0xff] }
 0x2bb   : > { %v642_v36 = vsel %vm467_vm5, %v452_v32, 0.0  ;;  %v1947_v32 = vld [vmem:[%s3589_s7 + $0x38] sm:$0xff] }
 0x2bc   : > { %v506_v45 = vadd.f32 %v505_v41, %v504_v39  ;;  %v603_v49 = vadd.f32 %v602_v44, %v601_v43  ;;  %v527_v43 = vsel %vm467_vm5, %v431_v38, 0.0  ;;  %v433_v44 = vld [vmem:[%s3243_s17 + $0x1f0] sm:$0xff]  ;;  %v454_v38 = vld [vmem:[%s3243_s17 + $0x298] sm:$0xff] }
 0x2bd   : > { %v644_v42 = vsel %vm467_vm5, %v454_v38, 0.0  ;;  %v1950_v38 = vld [vmem:[%s3589_s7 + $0x50] sm:$0xff] }
 0x2be   : > { %v508_v51 = vadd.f32 %v507_v47, %v506_v45  ;;  %v605_v55 = vadd.f32 %v604_v50, %v603_v49  ;;  %v529_v49 = vsel %vm467_vm5, %v433_v44, 0.0  ;;  %v435_v50 = vld [vmem:[%s3243_s17 + $0x200] sm:$0xff]  ;;  %v456_v44 = vld [vmem:[%s3243_s17 + $0x2a8] sm:$0xff] }
 0x2bf   : > { %v646_v48 = vsel %vm467_vm5, %v456_v44, 0.0  ;;  %v1954_v44 = vld [vmem:[%s3589_s7 + $0x70] sm:$0xff] }
 0x2c0   : > { %v510_v57 = vadd.f32 %v509_v53, %v508_v51  ;;  %v607_v61 = vadd.f32 %v606_v56, %v605_v55  ;;  %v531_v55 = vsel %vm467_vm5, %v435_v50, 0.0  ;;  %v437_v56 = vld [vmem:[%s3243_s17 + $0x210] sm:$0xff]  ;;  %v458_v50 = vld [vmem:[%s3243_s17 + $0x2b8] sm:$0xff] }
 0x2c1   : > { %v648_v54 = vsel %vm467_vm5, %v458_v50, 0.0 }
 0x2c2   : > { %v512_v63 = vadd.f32 %v511_v59, %v510_v57  ;;  %v609_v3 = vadd.f32 %v608_v62, %v607_v61  ;;  %v533_v61 = vsel %vm467_vm5, %v437_v56, 0.0  ;;  %v439_v62 = vld [vmem:[%s3243_s17 + $0x220] sm:$0xff]  ;;  %v460_v56 = vld [vmem:[%s3243_s17 + $0x2c8] sm:$0xff] }
 0x2c3   : > { %v650_v60 = vsel %vm467_vm5, %v460_v56, 0.0 }
 0x2c4   : > { %v514_v5 = vadd.f32 %v513_v1, %v512_v63  ;;  %v611_v9 = vadd.f32 %v610_v4, %v609_v3  ;;  %v535_v3 = vsel %vm467_vm5, %v439_v62, 0.0  ;;  %v441_v4 = vld [vmem:[%s3243_s17 + $0x230] sm:$0xff]  ;;  %v462_v62 = vld [vmem:[%s3243_s17 + $0x2d8] sm:$0xff] }
 0x2c5   : > { %v652_v2 = vsel %vm467_vm5, %v462_v62, 0.0 }
 0x2c6   : > { %v516_v11 = vadd.f32 %v515_v7, %v514_v5  ;;  %v613_v15 = vadd.f32 %v612_v10, %v611_v9  ;;  %v537_v9 = vsel %vm467_vm5, %v441_v4, 0.0  ;;  %v443_v10 = vld [vmem:[%s3243_s17 + $0x240] sm:$0xff]  ;;  %v464_v4 = vld [vmem:[%s3243_s17 + $0x2e8] sm:$0xff] }
 0x2c7   : > { %v654_v8 = vsel %vm467_vm5, %v464_v4, 0.0 }
 0x2c8   : > { %v518_v17 = vadd.f32 %v517_v13, %v516_v11  ;;  %v615_v21 = vadd.f32 %v614_v16, %v613_v15  ;;  %v539_v15 = vsel %vm467_vm5, %v443_v10, 0.0  ;;  %v445_v16 = vld [vmem:[%s3243_s17 + $0x250] sm:$0xff]  ;;  %v466_v10 = vld [vmem:[%s3243_s17 + $0x2f8] sm:$0xff] }
 0x2c9   : > { %v656_v14 = vsel %vm467_vm5, %v466_v10, 0.0 }
 0x2ca   : > { %v520_v23 = vadd.f32 %v519_v19, %v518_v17  ;;  %v617_v27 = vadd.f32 %v616_v22, %v615_v21  ;;  %v541_v21 = vsel %vm467_vm5, %v445_v16, 0.0  ;;  %v447_v22 = vld [vmem:[%s3243_s17 + $0x260] sm:$0xff] }
 0x2cc   : > { %v522_v29 = vadd.f32 %v521_v25, %v520_v23  ;;  %v619_v33 = vadd.f32 %v618_v28, %v617_v27  ;;  %v543_v27 = vsel %vm467_vm5, %v447_v22, 0.0  ;;  %v449_v28 = vld [vmem:[%s3243_s17 + $0x270] sm:$0xff] }
 0x2ce   : > { %v524_v35 = vadd.f32 %v523_v31, %v522_v29  ;;  %v621_v39 = vadd.f32 %v620_v34, %v619_v33  ;;  %v545_v33 = vsel %vm467_vm5, %v449_v28, 0.0  ;;  %v451_v34 = vld [vmem:[%s3243_s17 + $0x280] sm:$0xff] }
 0x2cf   : > { %v1940_v28 = vld [vmem:[%s3589_s7] sm:$0xff] }
 0x2d0   : > { %v526_v41 = vadd.f32 %v525_v37, %v524_v35  ;;  %v623_v45 = vadd.f32 %v622_v40, %v621_v39  ;;  %v547_v39 = vsel %vm467_vm5, %v451_v34, 0.0  ;;  %v453_v40 = vld [vmem:[%s3243_s17 + $0x290] sm:$0xff]  ;;  %v1948_v34 = vld [vmem:[%s3589_s7 + $0x40] sm:$0xff] }
 0x2d2   : > { %v528_v47 = vadd.f32 %v527_v43, %v526_v41  ;;  %v625_v51 = vadd.f32 %v624_v46, %v623_v45  ;;  %v549_v45 = vsel %vm467_vm5, %v453_v40, 0.0  ;;  %v455_v46 = vld [vmem:[%s3243_s17 + $0x2a0] sm:$0xff]  ;;  %v1951_v40 = vld [vmem:[%s3589_s7 + $0x58] sm:$0xff] }
 0x2d4   : > { %v530_v53 = vadd.f32 %v529_v49, %v528_v47  ;;  %v627_v57 = vadd.f32 %v626_v52, %v625_v51  ;;  %v551_v51 = vsel %vm467_vm5, %v455_v46, 0.0  ;;  %v457_v52 = vld [vmem:[%s3243_s17 + $0x2b0] sm:$0xff] }
 0x2d6   : > { %v532_v59 = vadd.f32 %v531_v55, %v530_v53  ;;  %v629_v63 = vadd.f32 %v628_v58, %v627_v57  ;;  %v553_v57 = vsel %vm467_vm5, %v457_v52, 0.0  ;;  %v459_v58 = vld [vmem:[%s3243_s17 + $0x2c0] sm:$0xff] }
 0x2d8   : > { %v534_v1 = vadd.f32 %v533_v61, %v532_v59  ;;  %v631_v5 = vadd.f32 %v630_v0, %v629_v63  ;;  %v555_v63 = vsel %vm467_vm5, %v459_v58, 0.0  ;;  %v461_v0 = vld [vmem:[%s3243_s17 + $0x2d0] sm:$0xff] }
 0x2da   : > { %v536_v7 = vadd.f32 %v535_v3, %v534_v1  ;;  %v633_v11 = vadd.f32 %v632_v6, %v631_v5  ;;  %v557_v5 = vsel %vm467_vm5, %v461_v0, 0.0  ;;  %v463_v6 = vld [vmem:[%s3243_s17 + $0x2e0] sm:$0xff] }
 0x2dc   : > { %v538_v13 = vadd.f32 %v537_v9, %v536_v7  ;;  %v635_v17 = vadd.f32 %v634_v12, %v633_v11  ;;  %v559_v11 = vsel %vm467_vm5, %v463_v6, 0.0  ;;  %v465_v12 = vld [vmem:[%s3243_s17 + $0x2f0] sm:$0xff]  ;;  %s2456_s17 = scalar_lea.vmem %s2455_s16, 4096 }
 0x2dd   : > { %v561_v16 = vsel %vm467_vm5, %v465_v12, 0.0  ;;  %p2458_p1 = scmp.lt.s32.totalorder %s2456_s17, %s2450_s29 }
 0x2de   : > { %v540_v19 = vadd.f32 %v539_v15, %v538_v13  ;;  %v637_v23 = vadd.f32 %v636_v18, %v635_v17 }
 0x2df   : > { %p2459_p2 = por %p2458_p1, %p2457_p0 }
 0x2e0   : > { %v542_v25 = vadd.f32 %v541_v21, %v540_v19  ;;  %v639_v29 = vadd.f32 %v638_v24, %v637_v23 }
 0x2e1   : > { %p2460_p3 = pnand %p2459_p2, %p2453_p13 }
 0x2e2   : > { %v544_v31 = vadd.f32 %v543_v27, %v542_v25  ;;  %v641_v35 = vadd.f32 %v640_v30, %v639_v29  ;;  %v1946_v27 = vld [vmem:[%s3589_s7 + $0x30] sm:$0xff] }
 0x2e3   : > { %2377 = vmatprep.mubr.msk.f32.mxu1 %vm467_vm5, %v1946_v27 }
 0x2e4   : > { %v546_v37 = vadd.f32 %v545_v33, %v544_v31  ;;  %v643_v41 = vadd.f32 %v642_v36, %v641_v35  ;;  %v1941_v33 = vld [vmem:[%s3589_s7 + $0x8] sm:$0xff]  ;;  %v1942_v35 = vld [vmem:[%s3589_s7 + $0x10] sm:$0xff] }
 0x2e5   : > { %v1949_v36 = vld [vmem:[%s3589_s7 + $0x48] sm:$0xff] }
 0x2e6   : > { %v548_v43 = vadd.f32 %v547_v39, %v546_v37  ;;  %v645_v47 = vadd.f32 %v644_v42, %v643_v41  ;;  %v1943_v37 = vld [vmem:[%s3589_s7 + $0x18] sm:$0xff]  ;;  %v1944_v39 = vld [vmem:[%s3589_s7 + $0x20] sm:$0xff]  ;;  %v1945_v41 = vld [vmem:[%s3589_s7 + $0x28] sm:$0xff] }
 0x2e7   : > { %v1952_v42 = vld [vmem:[%s3589_s7 + $0x60] sm:$0xff] }
 0x2e8   : > { %v550_v49 = vadd.f32 %v549_v45, %v548_v43  ;;  %v647_v53 = vadd.f32 %v646_v48, %v645_v47  ;;  %v1953_v43 = vld [vmem:[%s3589_s7 + $0x68] sm:$0xff]  ;;  %v1955_v45 = vld [vmem:[%s3589_s7 + $0x78] sm:$0xff] }
 0x2ea   : > { %v552_v55 = vadd.f32 %v551_v51, %v550_v49  ;;  %v649_v59 = vadd.f32 %v648_v54, %v647_v53 }
 0x2ec   : > { %v554_v61 = vadd.f32 %v553_v57, %v552_v55  ;;  %v651_v1 = vadd.f32 %v650_v60, %v649_v59 }
 0x2ee   : > { %v556_v3 = vadd.f32 %v555_v63, %v554_v61  ;;  %v653_v7 = vadd.f32 %v652_v2, %v651_v1 }
 0x2f0   : > { %v558_v9 = vadd.f32 %v557_v5, %v556_v3  ;;  %v655_v13 = vadd.f32 %v654_v8, %v653_v7 }
 0x2f2   : > { %v560_v15 = vadd.f32 %v559_v11, %v558_v9  ;;  %v657_v17 = vadd.f32 %v656_v14, %v655_v13 }
 0x2f4   : > { %v562_v18 = vadd.f32 %v561_v16, %v560_v15  ;;  %v660_v19 = vmul.f32 0.020833334, %v657_v17 }
 0x2f6   : > { %v659_v20 = vmul.f32 0.020833334, %v562_v18 }
 0x37c   : > { %v2356_v21 = vpop.f32.mrb[0].mxu1 }
 0x37d   : > { %v2402_v22 = vadd.f32 %v2356_v21, %v660_v19  ;;  %v1842_v23 = vpop.f32.mrb[1].mxu1 }
 0x37e   : > { %v2403_v24 = vadd.f32 %v1842_v23, %v659_v20 }
 0x37f   : > { %v1856_v26 = vmul.f32 0.33333334, %v2402_v22 }
 0x380   : > { %v1855_v25 = vmul.f32 0.33333334, %v2403_v24 }
 0x382   : > { %2361 = vmatprep.mubr.msk.f32.mxu0 %vm467_vm5, %v1855_v25 }
 0x383   : > { %2362 = vmatmul.mubr.msk.f32.vlgmr.msra.gmra.mrb[4].mxu0 %vm467_vm5, %v1856_v26 }
 0x384   : > { %2368 = vmatprep.mubr.msk.f32.mxu0 %vm467_vm5, %v1940_v28 }
 0x456   : > { %v2363_v29 = vpop.f32.mrb[4].mxu0 }
 0x457   : > { %v1931_v30 = vpop.f32.mrb[5].mxu0 }
 0x458   : > { %v2396_v31 = vpack.c.bf16 %v2363_v29, %v1931_v30 }
 0x45a   : > { %2397 = vmatprep.subr.bf16.mxu0 %v2396_v31  ;;  %2400 = vmatprep.subr.bf16.mxu1 %v2396_v31 }
 0x45b   : > { %2399 = vmatpush3.bf16.msra.mxu0 %v2396_v31  ;;  %2401 = vmatpush3.bf16.msra.mxu1 %v2396_v31 }
 0x45e   : > { %2378 = vmatmul.mubr.msk.f32.vlgmr.msra.gmra.mrb[2].mxu1 %vm467_vm5, %v1947_v32  ;;  %2369 = vmatmul.mubr.msk.f32.vlgmr.msra.gmra.mrb[6].mxu0 %vm467_vm5, %v1941_v33 }
 0x45f   : > { %2380 = vmatprep.mubr.msk.f32.mxu1 %vm467_vm5, %v1948_v34  ;;  %2371 = vmatprep.mubr.msk.f32.mxu0 %vm467_vm5, %v1942_v35 }
 0x462   : > { %2381 = vmatmul.mubr.msk.f32.gmra.mrb[4].mxu1 %vm467_vm5, %v1949_v36  ;;  %2372 = vmatmul.mubr.msk.f32.gmra.mrb[8].mxu0 %vm467_vm5, %v1943_v37 }
 0x463   : > { %2383 = vmatprep.mubr.msk.f32.mxu1 %vm467_vm5, %v1950_v38  ;;  %2374 = vmatprep.mubr.msk.f32.mxu0 %vm467_vm5, %v1944_v39 }
 0x466   : > { %2384 = vmatmul.mubr.msk.f32.gmra.mrb[6].mxu1 %vm467_vm5, %v1951_v40  ;;  %2375 = vmatmul.mubr.msk.f32.gmra.mrb[10].mxu0 %vm467_vm5, %v1945_v41 }
 0x467   : > { %2386 = vmatprep.mubr.msk.f32.mxu1 %vm467_vm5, %v1952_v42 }
 0x46a   : > { %2387 = vmatmul.mubr.msk.f32.gmra.mrb[8].mxu1 %vm467_vm5, %v1953_v43 }
 0x46b   : > { %2389 = vmatprep.mubr.msk.f32.mxu1 %vm467_vm5, %v1954_v44 }
 0x46e   : > { %2390 = vmatmul.mubr.msk.f32.gmra.mrb[10].mxu1 %vm467_vm5, %v1955_v45 }
 0x531   : > { %v2379_v46 = vpop.f32.mrb[2].mxu1  ;;  %v2370_v47 = vpop.f32.mrb[6].mxu0 }
 0x532   : > { %2156 = vst [vmem:[%s3512_s22 + $0x38] sm:$0xff] %v2379_v46  ;;  %v2100_v48 = vpop.f32.mrb[3].mxu1  ;;  %2150 = vst [vmem:[%s3512_s22 + $0x8] sm:$0xff] %v2370_v47  ;;  %v2070_v49 = vpop.f32.mrb[7].mxu0 }
 0x533   : > { %2155 = vst [vmem:[%s3512_s22 + $0x30] sm:$0xff] %v2100_v48  ;;  %2149 = vst [vmem:[%s3512_s22] sm:$0xff] %v2070_v49 }
 0x535   : > { %v2382_v50 = vpop.f32.mrb[4].mxu1  ;;  %v2373_v51 = vpop.f32.mrb[8].mxu0 }
 0x536   : > { %2158 = vst [vmem:[%s3512_s22 + $0x48] sm:$0xff] %v2382_v50  ;;  %v2110_v52 = vpop.f32.mrb[5].mxu1  ;;  %2152 = vst [vmem:[%s3512_s22 + $0x18] sm:$0xff] %v2373_v51  ;;  %v2080_v53 = vpop.f32.mrb[9].mxu0 }
 0x537   : > { %2157 = vst [vmem:[%s3512_s22 + $0x40] sm:$0xff] %v2110_v52  ;;  %2151 = vst [vmem:[%s3512_s22 + $0x10] sm:$0xff] %v2080_v53 }
 0x539   : > { %v2385_v54 = vpop.f32.mrb[6].mxu1  ;;  %v2376_v55 = vpop.f32.mrb[10].mxu0 }
 0x53a   : > { %2160 = vst [vmem:[%s3512_s22 + $0x58] sm:$0xff] %v2385_v54  ;;  %v2120_v56 = vpop.f32.mrb[7].mxu1  ;;  %2154 = vst [vmem:[%s3512_s22 + $0x28] sm:$0xff] %v2376_v55  ;;  %v2090_v57 = vpop.f32.mrb[11].mxu0 }
 0x53b   : > { %2159 = vst [vmem:[%s3512_s22 + $0x50] sm:$0xff] %v2120_v56  ;;  %2153 = vst [vmem:[%s3512_s22 + $0x20] sm:$0xff] %v2090_v57 }
 0x53d   : > { %v2388_v58 = vpop.f32.mrb[8].mxu1 }
 0x53e   : > { %2162 = vst [vmem:[%s3512_s22 + $0x68] sm:$0xff] %v2388_v58  ;;  %v2130_v59 = vpop.f32.mrb[9].mxu1 }
 0x53f   : > { %2161 = vst [vmem:[%s3512_s22 + $0x60] sm:$0xff] %v2130_v59 }
 0x541   : > { %v2391_v60 = vpop.f32.mrb[10].mxu1 }
 0x542   : > { %2164 = vst [vmem:[%s3512_s22 + $0x78] sm:$0xff] %v2391_v60  ;;  %v2140_v61 = vpop.f32.mrb[11].mxu1 }
 0x543   : > { %2163 = vst [vmem:[%s3512_s22 + $0x70] sm:$0xff] %v2140_v61 }
 0x544   : > { %2463 = shalt.err (!%p2460_p3)
}
 0x545   : > { %s2464_s24 = scalar_lea.hbm %s3533_s28, 2048  ;;  %s2468_s23 = scalar_lea.hbm %s3591_s9, 4096 }
 0x546   : > { %p2465_p4 = scmp.ne.s32.totalorder %s3533_s28, %s2464_s24  ;;  %p2469_p9 = scmp.lt.u32.totalorder %s3533_s28, %s3591_s9 }
 0x547   : > { %p2470_p10 = scmp.lt.u32.totalorder %s2468_s23, %s2464_s24  ;;  %p2472_p12 = scmp.lt.u32.totalorder %s2464_s24, %s3533_s28 }
 0x548   : > { %p2466_p7 = pnand %p2465_p4, %p2607_p5 }
 0x549   : > { %p2471_p11 = por %p2470_p10, %p2469_p9 }
 0x54a   : > { %p2467_p8 = pneg %p2466_p7 }
 0x54b   : > { %p2473_p13 = por %p2472_p12, %p2471_p11 }
 0x54d   : > { %p2474_p0 = pnand %p2473_p13, %p2467_p8 }
 0x54f   : > { %2477 = shalt.err (!%p2474_p0)
}
 0x550   : > { %s2517_s29 = smov 128   ;;  %s2518_s14 = smov 8  }
 0x551   : > { %2407 = dma.vmem_to_hbm [thread:$0]  (%p2607_p5), %s3535_s25, 2048, %s3533_s28, %s3541_s13, %s2517_s29, %s2517_s29, %s2518_s14  }
 0x552 PF: > { %p2413_p1 = scmp.ge.s32.totalorder %s2512_s12, 2  ;;  %s2194_s16 = sand.u32 1, %s2500_s30  }
 0x553   : > { %s2195_s17 = scalar_lea.sflag [#allocation3], %s2194_s16 }
 0x554   : > { %p2410_p2 = pnand %p2413_p1, %p2611_p6 }
 0x556   : > { %2495 = dma.done.wait (!%p2410_p2), %s2195_s17, 2048  }
 0x557   : > { %2497 = vsyncadd (!%p2410_p2), %s2195_s17, 4294965248  ;;  %p19_p3 = scmp.ge.s32.totalorder %s2594_s15, 4   ;;  %s3594_s30 = smov %s2504_s10 }
 0x558   : > { %s3595_s10 = smov %s2508_s11  ;;  %s3596_s11 = smov %s2605_s18 }
 0x559   : > { %s3597_s12 = smov %s2594_s15  ;;  %21 = sbr.rel (!%p19_p3) target bundleno = 3 (0x3), region = 97 }
 0x560   :  { %2200 = vsyncpa [#allocation3], 1 }
 0x561   :  { %2202 = vsyncpa [#allocation3 + $0x1], 1 }

</bundles_post_ra>
